<compile_context>
chip_gen: v7x
topology: tpu7x:2x2x1
jax: 0.10.0
libtpu: 0.0.40
codegen_flags: <defaults>
</compile_context>

<pallas_src>
import jax
import jax.numpy as jnp
from jax import lax
from jax.experimental import pallas as pl
from jax.experimental.pallas import tpu as pltpu


def _round_up(a: int, b: int) -> int:
    return ((a + b - 1) // b) * b


def _pad_to(arr, shape):
    pads = [(0, t - s) for s, t in zip(arr.shape, shape)]
    if any(p for _, p in pads):
        return jnp.pad(arr, pads)
    return arr


def embed_mlp_kernel(ids_ref, table_ref, w1_ref, b1_ref, w2_ref, b2_ref, out_ref):
    """One (TN, O_pad) output tile: one-hot MXU embedding gather + 2-layer MLP.

    ids_ref    VMEM (TN, 1)        int32  token ids for this tile
    table_ref  VMEM (V_pad, H_pad) bf16   resident across the grid
    w1_ref     VMEM (H_pad, H_pad) bf16   resident
    b1_ref     VMEM (1, H_pad)     f32    resident
    w2_ref     VMEM (H_pad, O_pad) bf16   resident
    b2_ref     VMEM (1, O_pad)     f32    resident
    out_ref    VMEM (TN, O_pad)    bf16   output tile
    """
    tn = ids_ref.shape[0]
    v = table_ref.shape[0]

    # One-hot gather on the MXU (exact row selection, f32 accumulate).
    ids = ids_ref[...]                                            # (TN, 1)
    iota = lax.broadcasted_iota(jnp.int32, (tn, v), 1)            # (TN, V)
    one_hot = (ids == iota).astype(jnp.bfloat16)                  # (TN, V)
    e = jnp.dot(one_hot, table_ref[...],
                preferred_element_type=jnp.float32).astype(jnp.bfloat16)

    # bf16 operands on the MXU, f32 accumulation; bias + ReLU in f32 on the VPU.
    h = jnp.dot(e, w1_ref[...], preferred_element_type=jnp.float32) + b1_ref[...]
    h = jnp.maximum(h, 0.0).astype(jnp.bfloat16)
    o = jnp.dot(h, w2_ref[...], preferred_element_type=jnp.float32) + b2_ref[...]
    out_ref[...] = o.astype(out_ref.dtype)


def simple_translation_forward(x, emb_table, w1_t, b1, w2_t, b2, *,
                               tile_n=256, out_dtype=jnp.bfloat16):
    """x: (B, S) int; emb_table: (V, H); w1_t: (H, H) = W1.T; w2_t: (H, O) = W2.T."""
    B, S = x.shape
    V, H = emb_table.shape
    O = w2_t.shape[1]
    N = B * S

    # Lane-dense padded dims (last dims multiples of 128).
    V_pad = _round_up(V, 128)
    H_pad = _round_up(H, 128)
    O_pad = _round_up(O, 128)

    # Row-tile: multiple of 8, capped at tile_n, and sized so there are >= 2
    # grid steps when possible (lets "parallel" shard across v7x's 2 TCs).
    TN = max(8, min(tile_n, _round_up(pl.cdiv(N, 2), 8)))
    N_pad = _round_up(N, TN)
    num_tiles = N_pad // TN

    # Clamp ids (no runtime OOB check on VMEM/one-hot path) and pad rows.
    ids = jnp.clip(x.reshape(-1).astype(jnp.int32), 0, V - 1)
    ids_2d = _pad_to(ids, (N_pad,)).reshape(N_pad, 1)

    table_p = _pad_to(emb_table.astype(jnp.bfloat16), (V_pad, H_pad))
    w1_p = _pad_to(w1_t.astype(jnp.bfloat16), (H_pad, H_pad))
    w2_p = _pad_to(w2_t.astype(jnp.bfloat16), (H_pad, O_pad))
    b1_p = _pad_to(b1.reshape(1, H).astype(jnp.float32), (1, H_pad))
    b2_p = _pad_to(b2.reshape(1, O).astype(jnp.float32), (1, O_pad))

    out_bytes = jnp.dtype(out_dtype).itemsize

    def run(single_buffer_residents: bool):
        res_kw = ({"pipeline_mode": pl.Buffered(1)}
                  if single_buffer_residents else {})
        n_res_bufs = 1 if single_buffer_residents else 2

        # VMEM budget: residents (table/W1/b1/W2/b2) + double-buffered ids/out
        # tiles + in-kernel intermediates (one-hot, e, h, o) + headroom.
        resident = (V_pad * H_pad * 2 + H_pad * H_pad * 2 + H_pad * O_pad * 2
                    + 8 * H_pad * 4 + 8 * O_pad * 4)
        tiles = 2 * (TN * 128 * 4 + TN * O_pad * out_bytes)
        interm = (TN * V_pad * 2 + 2 * TN * H_pad * 4 + TN * O_pad * 4)
        needed = n_res_bufs * resident + tiles + interm + (4 << 20)

        try:
            cap = int(pltpu.get_tpu_info().vmem_capacity_bytes)
        except Exception:
            cap = 64 << 20  # conservative (v7x per-TC VMEM)
        vmem_limit = int(min(max(needed, 32 << 20), int(cap * 0.75)))

        grid_spec = pltpu.PrefetchScalarGridSpec(
            num_scalar_prefetch=0,
            grid=(num_tiles,),
            in_specs=[
                pl.BlockSpec((TN, 1), lambda i: (i, 0)),                    # ids tile
                pl.BlockSpec((V_pad, H_pad), lambda i: (0, 0), **res_kw),   # table
                pl.BlockSpec((H_pad, H_pad), lambda i: (0, 0), **res_kw),   # W1^T
                pl.BlockSpec((1, H_pad), lambda i: (0, 0), **res_kw),       # b1
                pl.BlockSpec((H_pad, O_pad), lambda i: (0, 0), **res_kw),   # W2^T
                pl.BlockSpec((1, O_pad), lambda i: (0, 0), **res_kw),       # b2
            ],
            out_specs=pl.BlockSpec((TN, O_pad), lambda i: (i, 0)),
        )

        return pl.pallas_call(
            embed_mlp_kernel,
            out_shape=jax.ShapeDtypeStruct((N_pad, O_pad), out_dtype),
            grid_spec=grid_spec,
            compiler_params=pltpu.CompilerParams(
                dimension_semantics=("parallel",),
                vmem_limit_bytes=vmem_limit,
            ),
        )(ids_2d, table_p, w1_p, b1_p, w2_p, b2_p)

    try:
        out_flat = jax.block_until_ready(run(True))
    except Exception:
        # Fallback: default double-buffered residents if Buffered(1) is rejected.
        out_flat = jax.block_until_ready(run(False))

    return out_flat[:N, :O].reshape(B, S, O)


if __name__ == "__main__":
    # Small stand-ins for input_dim = output_dim = 5000, hidden_dim = 256.
    # Non-multiple-of-128 vocab/output exercise the padding path.
    B, S = 2, 8
    VOCAB = 500
    HIDDEN = 256
    OUT_DIM = 500

    key = jax.random.PRNGKey(0)
    k_emb, k_w1, k_b1, k_w2, k_b2, k_x = jax.random.split(key, 6)

    emb_table = jax.random.normal(k_emb, (VOCAB, HIDDEN), jnp.float32) * 0.02
    # PyTorch Linear weight is (out, in); we pass the transposed (in, out) form.
    w1_t = jax.random.normal(k_w1, (HIDDEN, HIDDEN), jnp.float32) * 0.05
    b1 = jax.random.normal(k_b1, (HIDDEN,), jnp.float32) * 0.01
    w2_t = jax.random.normal(k_w2, (HIDDEN, OUT_DIM), jnp.float32) * 0.05
    b2 = jax.random.normal(k_b2, (OUT_DIM,), jnp.float32) * 0.01

    x = jax.random.randint(k_x, (B, S), 0, VOCAB, dtype=jnp.int32)

    out = simple_translation_forward(x, emb_table, w1_t, b1, w2_t, b2)
    out = jax.block_until_ready(out)
    assert out.shape == (B, S, OUT_DIM)
    out_f32 = out.astype(jnp.float32)

    # Reference 1: same bf16-operand / f32-accumulate math (tight tolerance;
    # only difference is the final bf16 rounding of the output).
    e_q = jnp.take(emb_table, x.reshape(-1), axis=0).astype(jnp.bfloat16)
    h_q = jnp.dot(e_q, w1_t.astype(jnp.bfloat16),
                  preferred_element_type=jnp.float32) + b1
    h_q = jnp.maximum(h_q, 0.0).astype(jnp.bfloat16)
    ref_q = (jnp.dot(h_q, w2_t.astype(jnp.bfloat16),
                     preferred_element_type=jnp.float32) + b2
             ).reshape(B, S, OUT_DIM)
    assert jnp.allclose(out_f32, ref_q, atol=5e-3, rtol=5e-3), \
        float(jnp.max(jnp.abs(out_f32 - ref_q)))

    # Reference 2: full-f32 PyTorch-equivalent forward (loose bf16 tolerance).
    e_f = jnp.take(emb_table, x.reshape(-1), axis=0)
    h_f = jnp.maximum(e_f @ w1_t + b1, 0.0)
    ref_f = (h_f @ w2_t + b2).reshape(B, S, OUT_DIM)
    assert jnp.allclose(out_f32, ref_f, atol=2e-2, rtol=2e-2), \
        float(jnp.max(jnp.abs(out_f32 - ref_f)))

    print("KERNEL_OK")
</pallas_src>

<mosaic_0001>
module attributes {stable_mosaic.version = 11 : i64} {
  func.func @embed_mlp_kernel(%arg0: i32, %arg1: memref<8x1xi32, #tpu.memory_space<vmem>>, %arg2: memref<512x256xbf16, #tpu.memory_space<vmem>>, %arg3: memref<256x256xbf16, #tpu.memory_space<vmem>>, %arg4: memref<1x256xf32, #tpu.memory_space<vmem>>, %arg5: memref<256x512xbf16, #tpu.memory_space<vmem>>, %arg6: memref<1x512xf32, #tpu.memory_space<vmem>>, %arg7: memref<8x512xbf16, #tpu.memory_space<vmem>>) attributes {dimension_semantics = [#tpu.dimension_semantics<parallel>], iteration_bounds = array<i64: 2>, scalar_prefetch = 0 : i64, scratch_operands = 0 : i64, tpu.core_type = #tpu.core_type<tc>, window_params = [{transform_indices = @transform_0, window_bounds = array<i64: 8, 1>}, {pipeline_mode = #tpu.pipeline_mode<synchronous>, transform_indices = @transform_1, window_bounds = array<i64: 512, 256>}, {pipeline_mode = #tpu.pipeline_mode<synchronous>, transform_indices = @transform_2, window_bounds = array<i64: 256, 256>}, {pipeline_mode = #tpu.pipeline_mode<synchronous>, transform_indices = @transform_3, window_bounds = array<i64: 1, 256>}, {pipeline_mode = #tpu.pipeline_mode<synchronous>, transform_indices = @transform_4, window_bounds = array<i64: 256, 512>}, {pipeline_mode = #tpu.pipeline_mode<synchronous>, transform_indices = @transform_5, window_bounds = array<i64: 1, 512>}, {transform_indices = @transform_6, window_bounds = array<i64: 8, 512>}]} {
    %c0 = arith.constant 0 : index
    %c0_0 = arith.constant 0 : index
    %0 = vector.load %arg1[%c0, %c0_0] : memref<8x1xi32, #tpu.memory_space<vmem>>, vector<8x1xi32>
    %1 = tpu.iota {dimensions = array<i32: 1>} : vector<8x512xi32>
    %2 = vector.broadcast %0 : vector<8x1xi32> to vector<8x512xi32>
    %3 = arith.cmpi eq, %2, %1 : vector<8x512xi32>
    %4 = arith.extui %3 : vector<8x512xi1> to vector<8x512xi32>
    %5 = arith.sitofp %4 : vector<8x512xi32> to vector<8x512xf32>
    %6 = arith.truncf %5 : vector<8x512xf32> to vector<8x512xbf16>
    %c0_1 = arith.constant 0 : index
    %c0_2 = arith.constant 0 : index
    %7 = vector.load %arg2[%c0_1, %c0_2] : memref<512x256xbf16, #tpu.memory_space<vmem>>, vector<512x256xbf16>
    %cst = arith.constant dense<0.000000e+00> : vector<8x256xf32>
    %8 = tpu.matmul %6, %7, %cst {dimension_numbers = #tpu.dot_dimension_numbers<[1], [0], [0], [1], [0, 0, 1, 1], [], []>} : vector<8x512xbf16>, vector<512x256xbf16>, vector<8x256xf32> -> vector<8x256xf32>
    %9 = arith.truncf %8 : vector<8x256xf32> to vector<8x256xbf16>
    %c0_3 = arith.constant 0 : index
    %c0_4 = arith.constant 0 : index
    %10 = vector.load %arg3[%c0_3, %c0_4] : memref<256x256xbf16, #tpu.memory_space<vmem>>, vector<256x256xbf16>
    %cst_5 = arith.constant dense<0.000000e+00> : vector<8x256xf32>
    %11 = tpu.matmul %9, %10, %cst_5 {dimension_numbers = #tpu.dot_dimension_numbers<[1], [0], [0], [1], [0, 0, 1, 1], [], []>} : vector<8x256xbf16>, vector<256x256xbf16>, vector<8x256xf32> -> vector<8x256xf32>
    %c0_6 = arith.constant 0 : index
    %c0_7 = arith.constant 0 : index
    %12 = vector.load %arg4[%c0_6, %c0_7] : memref<1x256xf32, #tpu.memory_space<vmem>>, vector<1x256xf32>
    %13 = vector.broadcast %12 : vector<1x256xf32> to vector<8x256xf32>
    %14 = arith.addf %11, %13 : vector<8x256xf32>
    %cst_8 = arith.constant 0.000000e+00 : f32
    %15 = vector.broadcast %cst_8 : f32 to vector<8x256xf32>
    %16 = arith.maximumf %14, %15 : vector<8x256xf32>
    %17 = arith.truncf %16 : vector<8x256xf32> to vector<8x256xbf16>
    %c0_9 = arith.constant 0 : index
    %c0_10 = arith.constant 0 : index
    %18 = vector.load %arg5[%c0_9, %c0_10] : memref<256x512xbf16, #tpu.memory_space<vmem>>, vector<256x512xbf16>
    %cst_11 = arith.constant dense<0.000000e+00> : vector<8x512xf32>
    %19 = tpu.matmul %17, %18, %cst_11 {dimension_numbers = #tpu.dot_dimension_numbers<[1], [0], [0], [1], [0, 0, 1, 1], [], []>} : vector<8x256xbf16>, vector<256x512xbf16>, vector<8x512xf32> -> vector<8x512xf32>
    %c0_12 = arith.constant 0 : index
    %c0_13 = arith.constant 0 : index
    %20 = vector.load %arg6[%c0_12, %c0_13] : memref<1x512xf32, #tpu.memory_space<vmem>>, vector<1x512xf32>
    %21 = vector.broadcast %20 : vector<1x512xf32> to vector<8x512xf32>
    %22 = arith.addf %19, %21 : vector<8x512xf32>
    %23 = arith.truncf %22 : vector<8x512xf32> to vector<8x512xbf16>
    %c0_14 = arith.constant 0 : index
    %c0_15 = arith.constant 0 : index
    %24 = vector.load %arg7[%c0_14, %c0_15] : memref<8x512xbf16, #tpu.memory_space<vmem>>, vector<8x512xbf16>
    tpu.vector_store %arg7[%c0_14, %c0_15], %23 {strides = array<i32>} : memref<8x512xbf16, #tpu.memory_space<vmem>>, vector<8x512xbf16>,
    return
  }
  func.func @transform_0(%arg0: i32) -> (i32, i32) {
    %c0_i32 = arith.constant 0 : i32
    %c0_i32_0 = arith.constant 0 : i32
    return %arg0, %c0_i32 : i32, i32
  }
  func.func @transform_1(%arg0: i32) -> (i32, i32) {
    %c0_i32 = arith.constant 0 : i32
    %c0_i32_0 = arith.constant 0 : i32
    %c0_i32_1 = arith.constant 0 : i32
    return %c0_i32, %c0_i32_0 : i32, i32
  }
  func.func @transform_2(%arg0: i32) -> (i32, i32) {
    %c0_i32 = arith.constant 0 : i32
    %c0_i32_0 = arith.constant 0 : i32
    %c0_i32_1 = arith.constant 0 : i32
    return %c0_i32, %c0_i32_0 : i32, i32
  }
  func.func @transform_3(%arg0: i32) -> (i32, i32) {
    %c0_i32 = arith.constant 0 : i32
    %c0_i32_0 = arith.constant 0 : i32
    %c0_i32_1 = arith.constant 0 : i32
    return %c0_i32, %c0_i32_0 : i32, i32
  }
  func.func @transform_4(%arg0: i32) -> (i32, i32) {
    %c0_i32 = arith.constant 0 : i32
    %c0_i32_0 = arith.constant 0 : i32
    %c0_i32_1 = arith.constant 0 : i32
    return %c0_i32, %c0_i32_0 : i32, i32
  }
  func.func @transform_5(%arg0: i32) -> (i32, i32) {
    %c0_i32 = arith.constant 0 : i32
    %c0_i32_0 = arith.constant 0 : i32
    %c0_i32_1 = arith.constant 0 : i32
    return %c0_i32, %c0_i32_0 : i32, i32
  }
  func.func @transform_6(%arg0: i32) -> (i32, i32) {
    %c0_i32 = arith.constant 0 : i32
    %c0_i32_0 = arith.constant 0 : i32
    return %arg0, %c0_i32 : i32, i32
  }
}

module attributes {stable_mosaic.version = 11 : i64} {
  func.func @embed_mlp_kernel(%arg0: i32, %arg1: memref<8x1xi32, #tpu.memory_space<vmem>>, %arg2: memref<512x256xbf16, #tpu.memory_space<vmem>>, %arg3: memref<256x256xbf16, #tpu.memory_space<vmem>>, %arg4: memref<1x256xf32, #tpu.memory_space<vmem>>, %arg5: memref<256x512xbf16, #tpu.memory_space<vmem>>, %arg6: memref<1x512xf32, #tpu.memory_space<vmem>>, %arg7: memref<8x512xbf16, #tpu.memory_space<vmem>>) attributes {dimension_semantics = [#tpu.dimension_semantics<parallel>], iteration_bounds = array<i64: 2>, scalar_prefetch = 0 : i64, scratch_operands = 0 : i64, tpu.core_type = #tpu.core_type<tc>, window_params = [{transform_indices = @transform_0, window_bounds = array<i64: 8, 1>}, {pipeline_mode = #tpu.pipeline_mode<synchronous>, transform_indices = @transform_1, window_bounds = array<i64: 512, 256>}, {pipeline_mode = #tpu.pipeline_mode<synchronous>, transform_indices = @transform_2, window_bounds = array<i64: 256, 256>}, {pipeline_mode = #tpu.pipeline_mode<synchronous>, transform_indices = @transform_3, window_bounds = array<i64: 1, 256>}, {pipeline_mode = #tpu.pipeline_mode<synchronous>, transform_indices = @transform_4, window_bounds = array<i64: 256, 512>}, {pipeline_mode = #tpu.pipeline_mode<synchronous>, transform_indices = @transform_5, window_bounds = array<i64: 1, 512>}, {transform_indices = @transform_6, window_bounds = array<i64: 8, 512>}]} {
    %c0 = arith.constant 0 : index
    %c0_0 = arith.constant 0 : index
    %0 = vector.load %arg1[%c0, %c0_0] : memref<8x1xi32, #tpu.memory_space<vmem>>, vector<8x1xi32>
    %1 = tpu.iota {dimensions = array<i32: 1>} : vector<8x512xi32>
    %2 = vector.broadcast %0 : vector<8x1xi32> to vector<8x512xi32>
    %3 = arith.cmpi eq, %2, %1 : vector<8x512xi32>
    %4 = arith.extui %3 : vector<8x512xi1> to vector<8x512xi32>
    %5 = arith.sitofp %4 : vector<8x512xi32> to vector<8x512xf32>
    %6 = arith.truncf %5 : vector<8x512xf32> to vector<8x512xbf16>
    %c0_1 = arith.constant 0 : index
    %c0_2 = arith.constant 0 : index
    %7 = vector.load %arg2[%c0_1, %c0_2] : memref<512x256xbf16, #tpu.memory_space<vmem>>, vector<512x256xbf16>
    %cst = arith.constant dense<0.000000e+00> : vector<8x256xf32>
    %8 = tpu.matmul %6, %7, %cst {dimension_numbers = #tpu.dot_dimension_numbers<[1], [0], [0], [1], [0, 0, 1, 1], [], []>} : vector<8x512xbf16>, vector<512x256xbf16>, vector<8x256xf32> -> vector<8x256xf32>
    %9 = arith.truncf %8 : vector<8x256xf32> to vector<8x256xbf16>
    %c0_3 = arith.constant 0 : index
    %c0_4 = arith.constant 0 : index
    %10 = vector.load %arg3[%c0_3, %c0_4] : memref<256x256xbf16, #tpu.memory_space<vmem>>, vector<256x256xbf16>
    %cst_5 = arith.constant dense<0.000000e+00> : vector<8x256xf32>
    %11 = tpu.matmul %9, %10, %cst_5 {dimension_numbers = #tpu.dot_dimension_numbers<[1], [0], [0], [1], [0, 0, 1, 1], [], []>} : vector<8x256xbf16>, vector<256x256xbf16>, vector<8x256xf32> -> vector<8x256xf32>
    %c0_6 = arith.constant 0 : index
    %c0_7 = arith.constant 0 : index
    %12 = vector.load %arg4[%c0_6, %c0_7] : memref<1x256xf32, #tpu.memory_space<vmem>>, vector<1x256xf32>
    %13 = vector.broadcast %12 : vector<1x256xf32> to vector<8x256xf32>
    %14 = arith.addf %11, %13 : vector<8x256xf32>
    %cst_8 = arith.constant 0.000000e+00 : f32
    %15 = vector.broadcast %cst_8 : f32 to vector<8x256xf32>
    %16 = arith.maximumf %14, %15 : vector<8x256xf32>
    %17 = arith.truncf %16 : vector<8x256xf32> to vector<8x256xbf16>
    %c0_9 = arith.constant 0 : index
    %c0_10 = arith.constant 0 : index
    %18 = vector.load %arg5[%c0_9, %c0_10] : memref<256x512xbf16, #tpu.memory_space<vmem>>, vector<256x512xbf16>
    %cst_11 = arith.constant dense<0.000000e+00> : vector<8x512xf32>
    %19 = tpu.matmul %17, %18, %cst_11 {dimension_numbers = #tpu.dot_dimension_numbers<[1], [0], [0], [1], [0, 0, 1, 1], [], []>} : vector<8x256xbf16>, vector<256x512xbf16>, vector<8x512xf32> -> vector<8x512xf32>
    %c0_12 = arith.constant 0 : index
    %c0_13 = arith.constant 0 : index
    %20 = vector.load %arg6[%c0_12, %c0_13] : memref<1x512xf32, #tpu.memory_space<vmem>>, vector<1x512xf32>
    %21 = vector.broadcast %20 : vector<1x512xf32> to vector<8x512xf32>
    %22 = arith.addf %19, %21 : vector<8x512xf32>
    %23 = arith.truncf %22 : vector<8x512xf32> to vector<8x512xbf16>
    %c0_14 = arith.constant 0 : index
    %c0_15 = arith.constant 0 : index
    %24 = vector.load %arg7[%c0_14, %c0_15] : memref<8x512xbf16, #tpu.memory_space<vmem>>, vector<8x512xbf16>
    tpu.vector_store %arg7[%c0_14, %c0_15], %23 {strides = array<i32>} : memref<8x512xbf16, #tpu.memory_space<vmem>>, vector<8x512xbf16>,
    return
  }
  func.func @transform_0(%arg0: i32) -> (i32, i32) {
    %c0_i32 = arith.constant 0 : i32
    %c0_i32_0 = arith.constant 0 : i32
    return %arg0, %c0_i32 : i32, i32
  }
  func.func @transform_1(%arg0: i32) -> (i32, i32) {
    %c0_i32 = arith.constant 0 : i32
    %c0_i32_0 = arith.constant 0 : i32
    %c0_i32_1 = arith.constant 0 : i32
    return %c0_i32, %c0_i32_0 : i32, i32
  }
  func.func @transform_2(%arg0: i32) -> (i32, i32) {
    %c0_i32 = arith.constant 0 : i32
    %c0_i32_0 = arith.constant 0 : i32
    %c0_i32_1 = arith.constant 0 : i32
    return %c0_i32, %c0_i32_0 : i32, i32
  }
  func.func @transform_3(%arg0: i32) -> (i32, i32) {
    %c0_i32 = arith.constant 0 : i32
    %c0_i32_0 = arith.constant 0 : i32
    %c0_i32_1 = arith.constant 0 : i32
    return %c0_i32, %c0_i32_0 : i32, i32
  }
  func.func @transform_4(%arg0: i32) -> (i32, i32) {
    %c0_i32 = arith.constant 0 : i32
    %c0_i32_0 = arith.constant 0 : i32
    %c0_i32_1 = arith.constant 0 : i32
    return %c0_i32, %c0_i32_0 : i32, i32
  }
  func.func @transform_5(%arg0: i32) -> (i32, i32) {
    %c0_i32 = arith.constant 0 : i32
    %c0_i32_0 = arith.constant 0 : i32
    %c0_i32_1 = arith.constant 0 : i32
    return %c0_i32, %c0_i32_0 : i32, i32
  }
  func.func @transform_6(%arg0: i32) -> (i32, i32) {
    %c0_i32 = arith.constant 0 : i32
    %c0_i32_0 = arith.constant 0 : i32
    return %arg0, %c0_i32 : i32, i32
  }
}

</mosaic_0001>

<bundles_post_ra>
// kernel: tpu_custom_call.1
= control target key start
LH: loop header
LB: loop body
LE: loop exit
PB: predicated region body
PF: predicated region fallthrough
CT: control target
= control target key end

     0   :  { %11 = vsyncpa [#allocation3], 0  ;;  %s2588_s0 = inlined_call_operand.vmem [shape: s32[16,1], index: 0, kind: input, shape index: {}]   ;;  %s2589_s1 = inlined_call_operand.hbm [shape: bf16[512,256], index: 1, kind: input, shape index: {}]   ;;  %s2590_s2 = inlined_call_operand.hbm [shape: bf16[256,256], index: 2, kind: input, shape index: {}]   ;;  %s2591_s3 = inlined_call_operand.vmem [shape: f32[1,256], index: 3, kind: input, shape index: {}]   ;;  %s2592_s4 = inlined_call_operand.hbm [shape: bf16[256,512], index: 4, kind: input, shape index: {}]   ;;  %s2593_s5 = inlined_call_operand.vmem [shape: f32[1,512], index: 5, kind: input, shape index: {}]   ;;  %s2594_s6 = inlined_call_operand.hbm [shape: bf16[16,512], index: 6, kind: output, shape index: {}]  }
   0x1   :  { %12 = vsyncpa [#allocation6], 0 }
   0x2   :  { %13 = vsyncpa [#allocation4], 0 }
   0x3   :  { %15 = vsyncpa [#allocation4 + $0x1], 0  ;;  %s2360_s21 = smov 0   ;;  %s2362_s22 = smov 0  }
   0x4   :  { %s2364_s23 = smov 0   ;;  %s2366_s24 = smov 0  }
   0x5 LB: > { %2599 = sst [smem:[#allocation12_spill]] %s2309_s23  ;;  %s2381_s25 = sadd.s32 4294967295, %s2313_s24   ;;  %s2313_s24 = sphi %s2366_s24, %s2617_s24   ;;  %s2309_s23 = sphi %s2364_s23, %s2614_s23   ;;  %s2305_s22 = sphi %s2362_s22, %s2616_s22   ;;  %s2301_s21 = sphi %s2360_s21, %s2615_s21  }
   0x6   : > { %s1644_s26 = sadd.s32 4294967294, %s2313_s24   ;;  %s2385_s27 = sadd.s32 1, %s2313_s24  }
   0x7   : > { %s159_s28 = sadd.s32 1, %s2309_s23  ;;  %s156_s29 = ssub.s32 %s2313_s24, %s2385_s27 }
   0x8   : > { %p169_p0 = scmp.ne.s32.totalorder %s2309_s23, %s2305_s22  ;;  %p157_p1 = scmp.eq.s32.totalorder %s156_s29, 0 }
   0x9   : > { %p170_p2 = scmp.eq.s32.totalorder %s2381_s25, 1  ;;  %p175_p3 = scmp.ne.s32.totalorder %s2305_s22, %s2301_s21 }
   0xa   : > { %p176_p4 = scmp.eq.s32.totalorder %s1644_s26, 1  ;;  %p1645_p7 = scmp.ge.s32.totalorder %s2313_s24, 1 }
   0xb   : > { %s2396_s30 = scalar_select %p157_p1, %s2309_s23, %s159_s28  }
   0xc   : > { %p2398_p5 = por %p170_p2, %p169_p0  ;;  %p2402_p6 = por %p176_p4, %p175_p3 }
   0xd   : > { %2600 = sst [smem:[#allocation13_spill]] %s2396_s30  ;;  %p183_p8 = scmp.lt.s32.totalorder %s2313_s24, 3 }
   0xe   : > { %s2601_s7 = scalar_select %p2398_p5, 1, 0 }
   0xf   : > { %s2602_s8 = scalar_select %p2402_p6, 1, 0 }
  0x10   : > { %p2595_p9 = scmp.eq.s32.totalorder %s2381_s25, 0  ;;  %p2409_p10 = pnand %p1645_p7, %p183_p8 }
  0x11   : > { %s2315_s10 = smov [#allocation5]   ;;  %s2316_s13 = smov [#allocation2]  }
  0x12   : > { %s2603_s9 = scalar_select %p2409_p10, 1, 0 }
  0x13   : > { %p1856_p11 = pneg %p2409_p10  ;;  %s208_s11 = sshll.u32 %s2315_s10, 4  ;;  %s2415_s11 = int_to_ptr.vmem [resolvable:$true] %s208_s11 }
  0x14   : > { %s195_s14 = sshll.u32 %s2316_s13, 4  ;;  %s2317_s15 = smov [#allocation7]   ;;  %s2423_s14 = int_to_ptr.vmem [resolvable:$true] %s195_s14 }
  0x15   : > { %p2419_p12 = pnand %p2595_p9, %p1856_p11  ;;  %s2425_s16 = sshll.u32 %s2317_s15, 4  ;;  %s225_s16 = int_to_ptr.vmem [resolvable:$true] %s2425_s16 }
  0x16   : > { %s2159_s19 = scalar_lea.hbm %s2590_s2, 4096 }
  0x17   : > { %p2160_p13 = scmp.ne.s32.totalorder %s2590_s2, %s2159_s19  ;;  %p2435_p0 = pneg %p2419_p12 }
  0x18   : > { %p2166_p3 = scmp.lt.u32.totalorder %s2159_s19, %s2590_s2 }
  0x19   : > { %p2162_p1 = pnand %p2435_p0, %p2160_p13 }
  0x1b   : > { %p2163_p2 = pneg %p2162_p1 }
  0x1d   : > { %p2168_p4 = pnand %p2166_p3, %p2163_p2 }
  0x1f   : > { %2171 = shalt.err (!%p2168_p4)
}
  0x20   : > { %s2172_s13 = scalar_lea.vmem %s2415_s11, 4096  ;;  %p2180_p9 = scmp.lt.s32.totalorder %s2415_s11, %s2415_s11 }
  0x21   : > { %p2173_p7 = scmp.ne.s32.totalorder %s2415_s11, %s2172_s13  ;;  %p2181_p6 = scmp.lt.s32.totalorder %s2172_s13, %s2172_s13 }
  0x23   : > { %p2175_p8 = pnand %p2173_p7, %p2435_p0  ;;  %p2182_p13 = por %p2181_p6, %p2180_p9 }
  0x25   : > { %p2176_p11 = pneg %p2175_p8 }
  0x27   : > { %p2183_p1 = pnand %p2182_p13, %p2176_p11 }
  0x29   : > { %2186 = shalt.err (!%p2183_p1)
}
  0x2a   : > { %s2318_s15 = smov 128   ;;  %s2319_s17 = smov 8  }
  0x2b   : > { %1862 = dma.hbm_to_vmem [thread:$0]  (!%p2419_p12), %s2590_s2, 4096, %s2415_s11, [#allocation6], %s2318_s15, %s2318_s15, %s2319_s17  }
  0x2c   : > { %s2187_s29 = scalar_lea.hbm %s2589_s1, 8192 }
  0x2d   : > { %p2188_p6 = scmp.ne.s32.totalorder %s2589_s1, %s2187_s29  ;;  %p2194_p3 = scmp.lt.u32.totalorder %s2187_s29, %s2589_s1 }
  0x2f   : > { %p2190_p9 = pnand %p2188_p6, %p2435_p0 }
  0x31   : > { %p2191_p2 = pneg %p2190_p9 }
  0x33   : > { %p2196_p4 = pnand %p2194_p3, %p2191_p2 }
  0x35   : > { %2199 = shalt.err (!%p2196_p4)
}
  0x36   : > { %s2200_s11 = scalar_lea.vmem %s2423_s14, 8192  ;;  %p2208_p13 = scmp.lt.s32.totalorder %s2423_s14, %s2423_s14 }
  0x37   : > { %p2201_p7 = scmp.ne.s32.totalorder %s2423_s14, %s2200_s11  ;;  %p2209_p1 = scmp.lt.s32.totalorder %s2200_s11, %s2200_s11 }
  0x39   : > { %p2203_p8 = pnand %p2201_p7, %p2435_p0  ;;  %p2210_p6 = por %p2209_p1, %p2208_p13 }
  0x3b   : > { %p2204_p11 = pneg %p2203_p8 }
  0x3d   : > { %p2211_p9 = pnand %p2210_p6, %p2204_p11 }
  0x3f   : > { %2214 = shalt.err (!%p2211_p9)
}
  0x40   : > { %1859 = dma.hbm_to_vmem [thread:$0]  (!%p2419_p12), %s2589_s1, 8192, %s2423_s14, [#allocation3], %s2318_s15, %s2318_s15, %s2319_s17  }
  0x41   : > { %s2215_s20 = scalar_lea.hbm %s2592_s4, 8192 }
  0x42   : > { %p2216_p2 = scmp.ne.s32.totalorder %s2592_s4, %s2215_s20  ;;  %p2222_p7 = scmp.lt.u32.totalorder %s2215_s20, %s2592_s4 }
  0x44   : > { %p2218_p3 = pnand %p2216_p2, %p2435_p0 }
  0x46   : > { %p2219_p4 = pneg %p2218_p3 }
  0x48   : > { %p2224_p8 = pnand %p2222_p7, %p2219_p4 }
  0x4a   : > { %2227 = shalt.err (!%p2224_p8)
}
  0x4b   : > { %s2228_s11 = scalar_lea.vmem %s225_s16, 8192  ;;  %p2236_p6 = scmp.lt.s32.totalorder %s225_s16, %s225_s16 }
  0x4c   : > { %p2229_p11 = scmp.ne.s32.totalorder %s225_s16, %s2228_s11  ;;  %p2237_p9 = scmp.lt.s32.totalorder %s2228_s11, %s2228_s11 }
  0x4e   : > { %p2231_p13 = pnand %p2229_p11, %p2435_p0  ;;  %p2238_p5 = por %p2237_p9, %p2236_p6 }
  0x50   : > { %p2232_p1 = pneg %p2231_p13 }
  0x52   : > { %p2239_p10 = pnand %p2238_p5, %p2232_p1 }
  0x54   : > { %2242 = shalt.err (!%p2239_p10)
}
  0x55   : > { %s2320_s14 = smov 256   ;;  %s2321_s15 = smov 16  }
  0x56   : > { %1865 = dma.hbm_to_vmem [thread:$0]  (!%p2419_p12), %s2592_s4, 8192, %s225_s16, [#allocation6], %s2320_s14, %s2320_s14, %s2321_s15  }
  0x57   : > { %p2606_p2 = scmp.ne.s32.totalorder %s2603_s9, 0 }
  0x58   : > { %p2607_p3 = scmp.eq.s32.totalorder (!%p2606_p2), %s2381_s25, 0 }
  0x59   : > { %250 = sbr.rel (%p2606_p2) target bundleno = 970 (0x3ca), region = 44 }
  0x60   : > { %2288 = dma.done.wait (%p2607_p3), [#allocation3], 8192   ;;  %p2608_p0 = pmov %p2607_p3 }
  0x62   : > { %2290 = vsyncadd (%p2608_p0), [#allocation3], 4294959104  ;;  %p2609_p5 = pmov %p2608_p0 }
  0x63   : > { %p2610_p10 = pmov %p2608_p0 }
  0x64   : > { %2292 = dma.done.wait (%p2609_p5), [#allocation6], 12288  }
  0x65   : > { %2294 = vsyncadd (%p2610_p10), [#allocation6], 4294955008  ;;  %p287_p4 = scmp.lt.s32.totalorder %s2381_s25, 1  ;;  %v2322_v0 = vmov 0   ;;  %v1919_v2 = vld [vmem:[#allocation2 + $0x4] ss:$8 sps:$4 sm:$0xff]   ;;  %v292_v61 = vlaneseq }
  0x66   : > { %1918 = vset.pattern.permute.xlu0 %v2322_v0  ;;  %v1921_v3 = vld [vmem:[#allocation2] ss:$8 sps:$4 sm:$0xff]   ;;  %v1922_v4 = vld [vmem:[#allocation2 + $0x14] ss:$8 sps:$4 sm:$0xff]   ;;  %700 = vmatprep.subr.bf16.mxu0 %v1919_v2  ;;  %v1924_v5 = vld [vmem:[#allocation2 + $0x10] ss:$8 sps:$4 sm:$0xff]  }
  0x67   : > { %s288_s12 = scalar_select %p287_p4, %s2381_s25, 1  ;;  %701 = vmatpush1.bf16.msra.mxu0 %v1921_v3  ;;  %v1925_v6 = vld [vmem:[#allocation2 + $0x24] ss:$8 sps:$4 sm:$0xff]   ;;  %v1927_v7 = vld [vmem:[#allocation2 + $0x20] ss:$8 sps:$4 sm:$0xff]   ;;  %v2514_v0 = vand.u32 127, %v292_v61 }
  0x68   : > { %702 = vmatprep.subr.bf16.mxu0 %v1922_v4  ;;  %v1928_v8 = vld [vmem:[#allocation2 + $0x34] ss:$8 sps:$4 sm:$0xff]   ;;  %v1930_v9 = vld [vmem:[#allocation2 + $0x30] ss:$8 sps:$4 sm:$0xff]   ;;  %v1931_v10 = vld [vmem:[#allocation2 + $0x44] ss:$8 sps:$4 sm:$0xff]  }
  0x69   : > { %s1655_s9 = sshll.u32 %s288_s12, 3  ;;  %v1933_v11 = vld [vmem:[#allocation2 + $0x40] ss:$8 sps:$4 sm:$0xff]   ;;  %v1934_v12 = vld [vmem:[#allocation2 + $0x54] ss:$8 sps:$4 sm:$0xff]   ;;  %v294_v3 = vadd.s32 128, %v2514_v0 }
  0x6a   : > { %s290_s30 = scalar_lea.vmem %s2588_s0, %s1655_s9  ;;  %v1936_v13 = vld [vmem:[#allocation2 + $0x50] ss:$8 sps:$4 sm:$0xff]   ;;  %v1937_v14 = vld [vmem:[#allocation2 + $0x64] ss:$8 sps:$4 sm:$0xff]   ;;  %v1939_v15 = vld [vmem:[#allocation2 + $0x60] ss:$8 sps:$4 sm:$0xff]  }
  0x6b   : > { %v291_v1 = vld [vmem:[%s290_s30] sm:$0xff]  ;;  %703 = vmatpush1.bf16.msra.mxu0 %v1924_v5  ;;  %v1940_v16 = vld [vmem:[#allocation2 + $0x74] ss:$8 sps:$4 sm:$0xff]   ;;  %v1942_v17 = vld [vmem:[#allocation2 + $0x70] ss:$8 sps:$4 sm:$0xff]   ;;  %v296_v4 = vadd.s32 384, %v2514_v0 }
  0x6c   : > { %298 = vperm.xlu0 %1918, %v291_v1   ;;  %704 = vmatprep.subr.bf16.mxu0 %v1925_v6  ;;  %v1943_v18 = vld [vmem:[#allocation2 + $0x84] ss:$8 sps:$4 sm:$0xff]   ;;  %v1945_v19 = vld [vmem:[#allocation2 + $0x80] ss:$8 sps:$4 sm:$0xff]   ;;  %v1946_v20 = vld [vmem:[#allocation2 + $0x94] ss:$8 sps:$4 sm:$0xff]  }
  0x6d   : > { %v1948_v21 = vld [vmem:[#allocation2 + $0x90] ss:$8 sps:$4 sm:$0xff]   ;;  %v1949_v22 = vld [vmem:[#allocation2 + $0xa4] ss:$8 sps:$4 sm:$0xff]   ;;  %v1951_v23 = vld [vmem:[#allocation2 + $0xa0] ss:$8 sps:$4 sm:$0xff]  }
  0x6e   : > { %v1952_v24 = vld [vmem:[#allocation2 + $0xb4] ss:$8 sps:$4 sm:$0xff]   ;;  %v1954_v25 = vld [vmem:[#allocation2 + $0xb0] ss:$8 sps:$4 sm:$0xff]   ;;  %v1955_v26 = vld [vmem:[#allocation2 + $0xc4] ss:$8 sps:$4 sm:$0xff]  }
  0x6f   : > { %705 = vmatpush1.bf16.msra.mxu0 %v1927_v7  ;;  %v1957_v27 = vld [vmem:[#allocation2 + $0xc0] ss:$8 sps:$4 sm:$0xff]   ;;  %v1958_v28 = vld [vmem:[#allocation2 + $0xd4] ss:$8 sps:$4 sm:$0xff]   ;;  %v1960_v29 = vld [vmem:[#allocation2 + $0xd0] ss:$8 sps:$4 sm:$0xff]  }
  0x70   : > { %706 = vmatprep.subr.bf16.mxu0 %v1928_v8  ;;  %v1961_v30 = vld [vmem:[#allocation2 + $0xe4] ss:$8 sps:$4 sm:$0xff]   ;;  %v1963_v31 = vld [vmem:[#allocation2 + $0xe0] ss:$8 sps:$4 sm:$0xff]   ;;  %v1964_v32 = vld [vmem:[#allocation2 + $0xf4] ss:$8 sps:$4 sm:$0xff]  }
  0x71   : > { %v1966_v33 = vld [vmem:[#allocation2 + $0xf0] ss:$8 sps:$4 sm:$0xff]   ;;  %v1969_v34 = vld [vmem:[#allocation2 + $0x104] ss:$8 sps:$4 sm:$0xff]   ;;  %v2017_v36 = vld [vmem:[#allocation5] ss:$8 sps:$4 sm:$0xff]  }
  0x72   : > { %v2015_v35 = vld [vmem:[#allocation5 + $0x4] ss:$8 sps:$4 sm:$0xff]   ;;  %v2018_v37 = vld [vmem:[#allocation5 + $0x14] ss:$8 sps:$4 sm:$0xff]   ;;  %v2020_v38 = vld [vmem:[#allocation5 + $0x10] ss:$8 sps:$4 sm:$0xff]  }
  0x73   : > { %707 = vmatpush1.bf16.msra.mxu0 %v1930_v9  ;;  %988 = vmatprep.subr.bf16.mxu1 %v2015_v35  ;;  %v2021_v39 = vld [vmem:[#allocation5 + $0x24] ss:$8 sps:$4 sm:$0xff]   ;;  %v2023_v40 = vld [vmem:[#allocation5 + $0x20] ss:$8 sps:$4 sm:$0xff]   ;;  %v2024_v41 = vld [vmem:[#allocation5 + $0x34] ss:$8 sps:$4 sm:$0xff]  }
  0x74   : > { %708 = vmatprep.subr.bf16.mxu0 %v1931_v10  ;;  %989 = vmatpush1.bf16.msra.mxu1 %v2017_v36  ;;  %v2026_v42 = vld [vmem:[#allocation5 + $0x30] ss:$8 sps:$4 sm:$0xff]   ;;  %v2027_v43 = vld [vmem:[#allocation5 + $0x44] ss:$8 sps:$4 sm:$0xff]   ;;  %v2029_v44 = vld [vmem:[#allocation5 + $0x40] ss:$8 sps:$4 sm:$0xff]  }
  0x75   : > { %990 = vmatprep.subr.bf16.mxu1 %v2018_v37  ;;  %v2030_v45 = vld [vmem:[#allocation5 + $0x54] ss:$8 sps:$4 sm:$0xff]   ;;  %v2032_v46 = vld [vmem:[#allocation5 + $0x50] ss:$8 sps:$4 sm:$0xff]   ;;  %v2033_v47 = vld [vmem:[#allocation5 + $0x64] ss:$8 sps:$4 sm:$0xff]  }
  0x76   : > { %v2035_v48 = vld [vmem:[#allocation5 + $0x60] ss:$8 sps:$4 sm:$0xff]   ;;  %v2036_v49 = vld [vmem:[#allocation5 + $0x74] ss:$8 sps:$4 sm:$0xff]   ;;  %v2038_v50 = vld [vmem:[#allocation5 + $0x70] ss:$8 sps:$4 sm:$0xff]  }
  0x77   : > { %709 = vmatpush1.bf16.msra.mxu0 %v1933_v11  ;;  %v2039_v51 = vld [vmem:[#allocation5 + $0x84] ss:$8 sps:$4 sm:$0xff]   ;;  %v2041_v52 = vld [vmem:[#allocation5 + $0x80] ss:$8 sps:$4 sm:$0xff]   ;;  %v2042_v53 = vld [vmem:[#allocation5 + $0x94] ss:$8 sps:$4 sm:$0xff]  }
  0x78   : > { %710 = vmatprep.subr.bf16.mxu0 %v1934_v12  ;;  %991 = vmatpush1.bf16.msra.mxu1 %v2020_v38  ;;  %v2044_v54 = vld [vmem:[#allocation5 + $0x90] ss:$8 sps:$4 sm:$0xff]   ;;  %v2045_v55 = vld [vmem:[#allocation5 + $0xa4] ss:$8 sps:$4 sm:$0xff]   ;;  %v2047_v56 = vld [vmem:[#allocation5 + $0xa0] ss:$8 sps:$4 sm:$0xff]  }
  0x79   : > { %992 = vmatprep.subr.bf16.mxu1 %v2021_v39  ;;  %v2048_v57 = vld [vmem:[#allocation5 + $0xb4] ss:$8 sps:$4 sm:$0xff]   ;;  %v2050_v58 = vld [vmem:[#allocation5 + $0xb0] ss:$8 sps:$4 sm:$0xff]   ;;  %v2051_v59 = vld [vmem:[#allocation5 + $0xc4] ss:$8 sps:$4 sm:$0xff]  }
  0x7a   : > { %v2053_v60 = vld [vmem:[#allocation5 + $0xc0] ss:$8 sps:$4 sm:$0xff]   ;;  %v2054_v62 = vld [vmem:[#allocation5 + $0xd4] ss:$8 sps:$4 sm:$0xff]   ;;  %v2056_v63 = vld [vmem:[#allocation5 + $0xd0] ss:$8 sps:$4 sm:$0xff]  }
  0x7b   : > { %711 = vmatpush1.bf16.msra.mxu0 %v1936_v13  ;;  %v2057_v1 = vld [vmem:[#allocation5 + $0xe4] ss:$8 sps:$4 sm:$0xff]   ;;  %v2059_v2 = vld [vmem:[#allocation5 + $0xe0] ss:$8 sps:$4 sm:$0xff]   ;;  %v1972_v7 = vld [vmem:[#allocation2 + $0x114] ss:$8 sps:$4 sm:$0xff]  }
  0x7c   : > { %712 = vmatprep.subr.bf16.mxu0 %v1937_v14  ;;  %993 = vmatpush1.bf16.msra.mxu1 %v2023_v40  ;;  %v1967_v6 = vld [vmem:[#allocation2 + $0x100] ss:$8 sps:$4 sm:$0xff]   ;;  %v2323_v8 = vmov 1.0|1.0   ;;  %v1970_v9 = vld [vmem:[#allocation2 + $0x110] ss:$8 sps:$4 sm:$0xff]  }
  0x7d   : > { %994 = vmatprep.subr.bf16.mxu1 %v2024_v41  ;;  %v1975_v10 = vld [vmem:[#allocation2 + $0x124] ss:$8 sps:$4 sm:$0xff]   ;;  %v1973_v11 = vld [vmem:[#allocation2 + $0x120] ss:$8 sps:$4 sm:$0xff]   ;;  %v1978_v12 = vld [vmem:[#allocation2 + $0x134] ss:$8 sps:$4 sm:$0xff]  }
  0x7e   : > { %v1976_v13 = vld [vmem:[#allocation2 + $0x130] ss:$8 sps:$4 sm:$0xff]   ;;  %v1981_v14 = vld [vmem:[#allocation2 + $0x144] ss:$8 sps:$4 sm:$0xff]   ;;  %v2009_v35 = vld [vmem:[#allocation2 + $0x1e0] ss:$8 sps:$4 sm:$0xff]  }
  0x7f   : > { %713 = vmatpush1.bf16.msra.mxu0 %v1939_v15  ;;  %v1979_v15 = vld [vmem:[#allocation2 + $0x140] ss:$8 sps:$4 sm:$0xff]   ;;  %v2014_v36 = vld [vmem:[#allocation2 + $0x1f4] ss:$8 sps:$4 sm:$0xff]   ;;  %v295_v37 = vadd.s32 256, %v2514_v0  ;;  %s284_s20 = sand.u32 1, %s2305_s22  }
  0x80   : > { %714 = vmatprep.subr.bf16.mxu0 %v1940_v16  ;;  %995 = vmatpush1.bf16.msra.mxu1 %v2026_v42  ;;  %v1984_v16 = vld [vmem:[#allocation2 + $0x154] ss:$8 sps:$4 sm:$0xff]   ;;  %v2012_v38 = vld [vmem:[#allocation2 + $0x1f0] ss:$8 sps:$4 sm:$0xff]   ;;  %s1654_s10 = sshll.u32 %s284_s20, 4  ;;  %s1837_s13 = sshll.u32 %s2381_s25, 8 }
  0x81   : > { %996 = vmatprep.subr.bf16.mxu1 %v2027_v43  ;;  %v2060_v39 = vld [vmem:[#allocation5 + $0xf4] ss:$8 sps:$4 sm:$0xff]   ;;  %v2062_v40 = vld [vmem:[#allocation5 + $0xf0] ss:$8 sps:$4 sm:$0xff]   ;;  %s286_s11 = scalar_lea.vmem [#allocation8], %s1654_s10  ;;  %s2544_s23 = scalar_lea.hbm %s2594_s6, %s1837_s13 }
  0x82   : > { %v2065_v41 = vld [vmem:[#allocation7 + $0x4] ss:$16 sps:$4 sm:$0xff]   ;;  %v2066_v42 = vld [vmem:[#allocation7 + $0x8] ss:$16 sps:$4 sm:$0xff]   ;;  %v2068_v43 = vld [vmem:[#allocation7 + $0xc] ss:$16 sps:$4 sm:$0xff]  }
  0x83   : > { %715 = vmatpush1.bf16.msra.mxu0 %v1942_v17  ;;  %v1982_v17 = vld [vmem:[#allocation2 + $0x150] ss:$8 sps:$4 sm:$0xff]   ;;  %s1554_s14 = sshll.u32 %s286_s11, 4  ;;  %s1540_s25 = scalar_lea.sflag [#allocation4], %s284_s20  ;;  %s2546_s14 = int_to_ptr.vmem [resolvable:$true] %s1554_s14 }
  0x84   : > { %716 = vmatprep.subr.bf16.mxu0 %v1943_v18  ;;  %997 = vmatpush1.bf16.msra.mxu1 %v2029_v44  ;;  %v1987_v18 = vld [vmem:[#allocation2 + $0x164] ss:$8 sps:$4 sm:$0xff]   ;;  %s2243_s12 = scalar_lea.vmem %s2546_s14, 256  ;;  %p2611_p7 = scmp.ne.s32.totalorder %s2601_s7, 0 }
  0x85   : > { %998 = vmatprep.subr.bf16.mxu1 %v2030_v45  ;;  %v2074_v44 = vld [vmem:[#allocation7 + $0x2c] ss:$16 sps:$4 sm:$0xff]   ;;  %v2072_v45 = vld [vmem:[#allocation7 + $0x28] ss:$16 sps:$4 sm:$0xff]   ;;  %p2244_p12 = scmp.ne.s32.totalorder %s2546_s14, %s2243_s12  ;;  %s2324_s9 = smov [#allocation8]  }
  0x86   : > { %s2247_s16 = sshll.u32 %s2324_s9, 4  ;;  %s2248_s16 = int_to_ptr.vmem [resolvable:$false] %s2247_s16 }
  0x87   : > { %717 = vmatpush1.bf16.msra.mxu0 %v1945_v19  ;;  %v1985_v19 = vld [vmem:[#allocation2 + $0x160] ss:$8 sps:$4 sm:$0xff]   ;;  %p2245_p8 = pnand %p2244_p12, %p2611_p7  ;;  %s2249_s28 = scalar_lea.vmem %s2248_s16, 512 }
  0x88   : > { %718 = vmatprep.subr.bf16.mxu0 %v1946_v20  ;;  %999 = vmatpush1.bf16.msra.mxu1 %v2032_v46  ;;  %v1990_v20 = vld [vmem:[#allocation2 + $0x174] ss:$8 sps:$4 sm:$0xff]   ;;  %p2250_p13 = scmp.lt.s32.totalorder %s2546_s14, %s2248_s16  ;;  %p2251_p1 = scmp.lt.s32.totalorder %s2249_s28, %s2243_s12 }
  0x89   : > { %1000 = vmatprep.subr.bf16.mxu1 %v2033_v47  ;;  %v2080_v46 = vld [vmem:[#allocation7 + $0x4c] ss:$16 sps:$4 sm:$0xff]   ;;  %v2078_v47 = vld [vmem:[#allocation7 + $0x48] ss:$16 sps:$4 sm:$0xff]   ;;  %p2246_p11 = pneg %p2245_p8 }
  0x8a   : > { %p2252_p6 = por %p2251_p1, %p2250_p13 }
  0x8b   : > { %719 = vmatpush1.bf16.msra.mxu0 %v1948_v21  ;;  %v1988_v21 = vld [vmem:[#allocation2 + $0x170] ss:$8 sps:$4 sm:$0xff]  }
  0x8c   : > { %720 = vmatprep.subr.bf16.mxu0 %v1949_v22  ;;  %1001 = vmatpush1.bf16.msra.mxu1 %v2035_v48  ;;  %v1993_v22 = vld [vmem:[#allocation2 + $0x184] ss:$8 sps:$4 sm:$0xff]   ;;  %p2253_p9 = pnand %p2252_p6, %p2246_p11 }
  0x8d   : > { %1002 = vmatprep.subr.bf16.mxu1 %v2036_v49  ;;  %v2086_v48 = vld [vmem:[#allocation7 + $0x6c] ss:$16 sps:$4 sm:$0xff]   ;;  %v2084_v49 = vld [vmem:[#allocation7 + $0x68] ss:$16 sps:$4 sm:$0xff]  }
  0x8f   : > { %721 = vmatpush1.bf16.msra.mxu0 %v1951_v23  ;;  %v1991_v23 = vld [vmem:[#allocation2 + $0x180] ss:$8 sps:$4 sm:$0xff]  }
  0x90   : > { %722 = vmatprep.subr.bf16.mxu0 %v1952_v24  ;;  %1003 = vmatpush1.bf16.msra.mxu1 %v2038_v50  ;;  %v1996_v24 = vld [vmem:[#allocation2 + $0x194] ss:$8 sps:$4 sm:$0xff]  }
  0x91   : > { %1004 = vmatprep.subr.bf16.mxu1 %v2039_v51  ;;  %v2092_v50 = vld [vmem:[#allocation7 + $0x8c] ss:$16 sps:$4 sm:$0xff]   ;;  %v2090_v51 = vld [vmem:[#allocation7 + $0x88] ss:$16 sps:$4 sm:$0xff]  }
  0x93   : > { %723 = vmatpush1.bf16.msra.mxu0 %v1954_v25  ;;  %v1994_v25 = vld [vmem:[#allocation2 + $0x190] ss:$8 sps:$4 sm:$0xff]  }
  0x94   : > { %724 = vmatprep.subr.bf16.mxu0 %v1955_v26  ;;  %1005 = vmatpush1.bf16.msra.mxu1 %v2041_v52  ;;  %v1999_v26 = vld [vmem:[#allocation2 + $0x1a4] ss:$8 sps:$4 sm:$0xff]  }
  0x95   : > { %1006 = vmatprep.subr.bf16.mxu1 %v2042_v53  ;;  %v2098_v52 = vld [vmem:[#allocation7 + $0xac] ss:$16 sps:$4 sm:$0xff]   ;;  %v2096_v53 = vld [vmem:[#allocation7 + $0xa8] ss:$16 sps:$4 sm:$0xff]  }
  0x97   : > { %725 = vmatpush1.bf16.msra.mxu0 %v1957_v27  ;;  %v1997_v27 = vld [vmem:[#allocation2 + $0x1a0] ss:$8 sps:$4 sm:$0xff]  }
  0x98   : > { %726 = vmatprep.subr.bf16.mxu0 %v1958_v28  ;;  %1007 = vmatpush1.bf16.msra.mxu1 %v2044_v54  ;;  %v2002_v28 = vld [vmem:[#allocation2 + $0x1b4] ss:$8 sps:$4 sm:$0xff]  }
  0x99   : > { %1008 = vmatprep.subr.bf16.mxu1 %v2045_v55  ;;  %v2104_v54 = vld [vmem:[#allocation7 + $0xcc] ss:$16 sps:$4 sm:$0xff]   ;;  %v2102_v55 = vld [vmem:[#allocation7 + $0xc8] ss:$16 sps:$4 sm:$0xff]  }
  0x9b   : > { %727 = vmatpush1.bf16.msra.mxu0 %v1960_v29  ;;  %v2000_v29 = vld [vmem:[#allocation2 + $0x1b0] ss:$8 sps:$4 sm:$0xff]  }
  0x9c   : > { %728 = vmatprep.subr.bf16.mxu0 %v1961_v30  ;;  %1009 = vmatpush1.bf16.msra.mxu1 %v2047_v56  ;;  %v2005_v30 = vld [vmem:[#allocation2 + $0x1c4] ss:$8 sps:$4 sm:$0xff]  }
  0x9d   : > { %1010 = vmatprep.subr.bf16.mxu1 %v2048_v57  ;;  %v2110_v56 = vld [vmem:[#allocation7 + $0xec] ss:$16 sps:$4 sm:$0xff]   ;;  %v2108_v57 = vld [vmem:[#allocation7 + $0xe8] ss:$16 sps:$4 sm:$0xff]  }
  0x9f   : > { %729 = vmatpush1.bf16.msra.mxu0 %v1963_v31  ;;  %v2003_v31 = vld [vmem:[#allocation2 + $0x1c0] ss:$8 sps:$4 sm:$0xff]  }
  0xa0   : > { %730 = vmatprep.subr.bf16.mxu0 %v1964_v32  ;;  %1011 = vmatpush1.bf16.msra.mxu1 %v2050_v58  ;;  %v2008_v32 = vld [vmem:[#allocation2 + $0x1d4] ss:$8 sps:$4 sm:$0xff]  }
  0xa1   : > { %1012 = vmatprep.subr.bf16.mxu1 %v2051_v59  ;;  %v2116_v58 = vld [vmem:[#allocation7 + $0x10c] ss:$16 sps:$4 sm:$0xff]   ;;  %v2114_v59 = vld [vmem:[#allocation7 + $0x108] ss:$16 sps:$4 sm:$0xff]  }
  0xa3   : > { %731 = vmatpush1.bf16.msra.mxu0 %v1966_v33  ;;  %v2006_v33 = vld [vmem:[#allocation2 + $0x1d0] ss:$8 sps:$4 sm:$0xff]  }
  0xa4   : > { %741 = vmatprep.subr.bf16.mxu0 %v1969_v34  ;;  %1013 = vmatpush1.bf16.msra.mxu1 %v2053_v60  ;;  %v2011_v34 = vld [vmem:[#allocation2 + $0x1e4] ss:$8 sps:$4 sm:$0xff]  }
  0xa5   : > { %1014 = vmatprep.subr.bf16.mxu1 %v2054_v62  ;;  %v2122_v60 = vld [vmem:[#allocation7 + $0x12c] ss:$16 sps:$4 sm:$0xff]   ;;  %v2120_v62 = vld [vmem:[#allocation7 + $0x128] ss:$16 sps:$4 sm:$0xff]  }
  0xa8   : > { %1015 = vmatpush1.bf16.msra.mxu1 %v2056_v63  ;;  %v2128_v63 = vld [vmem:[#allocation7 + $0x14c] ss:$16 sps:$4 sm:$0xff]  }
  0xa9   : > { %1016 = vmatprep.subr.bf16.mxu1 %v2057_v1  ;;  %v2134_v1 = vld [vmem:[#allocation7 + $0x16c] ss:$16 sps:$4 sm:$0xff]  }
  0xac   : > { %1017 = vmatpush1.bf16.msra.mxu1 %v2059_v2  ;;  %v2132_v2 = vld [vmem:[#allocation7 + $0x168] ss:$16 sps:$4 sm:$0xff]  }
  0xad   : > { %1018 = vmatprep.subr.bf16.mxu1 %v2060_v39  ;;  %v2141_v39 = vld [vmem:[#allocation7 + $0x1a0] ss:$16 sps:$4 sm:$0xff]  }
  0xb0   : > { %1019 = vmatpush1.bf16.msra.mxu1 %v2062_v40  ;;  %v2149_v40 = vld [vmem:[#allocation7 + $0x1c4] ss:$16 sps:$4 sm:$0xff]  }
  0xb1   : > { %1439 = vmatprep.subr.bf16.mxu1 %v2065_v41  ;;  %v2152_v41 = vld [vmem:[#allocation7 + $0x1cc] ss:$16 sps:$4 sm:$0xff]  }
  0xeb   : > { %v2518_v5 = vpop.permute.xlu0 %298 }
  0xec   : > { %vm300_vm0 = vcmp.eq.s32.totalorder %v2518_v5, %v2514_v0  ;;  %vm301_vm1 = vcmp.eq.s32.totalorder %v2518_v5, %v294_v3  ;;  %vm303_vm2 = vcmp.eq.s32.totalorder %v2518_v5, %v296_v4  ;;  %vm302_vm6 = vcmp.eq.s32.totalorder %v2518_v5, %v295_v37  ;;  %v2126_v0 = vld [vmem:[#allocation7 + $0x148] ss:$16 sps:$4 sm:$0xff]   ;;  %v2140_v3 = vld [vmem:[#allocation7 + $0x18c] ss:$16 sps:$4 sm:$0xff]   ;;  %v2135_v37 = vld [vmem:[#allocation7 + $0x180] ss:$16 sps:$4 sm:$0xff]  }
  0xed   : > { %vm1724_vm3 = vmpackc.low %vm301_vm1, %vm301_vm1  ;;  %v2138_v4 = vld [vmem:[#allocation7 + $0x188] ss:$16 sps:$4 sm:$0xff]   ;;  %v2146_v5 = vld [vmem:[#allocation7 + $0x1ac] ss:$16 sps:$4 sm:$0xff]  }
  0xee   : > { %1725 = vmatprep.mubr.msk.bf16.mxu0 %vm1724_vm3, %v2323_v8  ;;  %vm1726_vm4 = vmpackc.low %vm300_vm0, %vm300_vm0 }
  0xef   : > { %1727 = vmatmul.mubr.msk.bf16.vlgmr.msra.gmra.mrb[0].mxu0 %vm1726_vm4, %v2323_v8  ;;  %vm1728_vm5 = vmpackc.low %vm303_vm2, %vm303_vm2 }
  0xf0   : > { %742 = vmatpush1.bf16.msra.mxu0 %v1967_v6  ;;  %1729 = vmatprep.mubr.msk.bf16.mxu0 %vm1728_vm5, %v2323_v8  ;;  %vm1730_vm7 = vmpackc.low %vm302_vm6, %vm302_vm6  ;;  %v2144_v6 = vld [vmem:[#allocation7 + $0x1a8] ss:$16 sps:$4 sm:$0xff]  }
  0xf1   : > { %743 = vmatprep.subr.bf16.mxu0 %v1972_v7 }
  0xf4   : > { %744 = vmatpush1.bf16.msra.mxu0 %v1970_v9 }
  0xf5   : > { %745 = vmatprep.subr.bf16.mxu0 %v1975_v10 }
  0xf8   : > { %746 = vmatpush1.bf16.msra.mxu0 %v1973_v11  ;;  %v2063_v11 = vld [vmem:[#allocation7] ss:$16 sps:$4 sm:$0xff]  }
  0xf9   : > { %747 = vmatprep.subr.bf16.mxu0 %v1978_v12 }
  0xfc   : > { %748 = vmatpush1.bf16.msra.mxu0 %v1976_v13 }
  0xfd   : > { %749 = vmatprep.subr.bf16.mxu0 %v1981_v14  ;;  %v2071_v14 = vld [vmem:[#allocation7 + $0x24] ss:$16 sps:$4 sm:$0xff]  }
 0x100   : > { %750 = vmatpush1.bf16.msra.mxu0 %v1979_v15  ;;  %v2069_v15 = vld [vmem:[#allocation7 + $0x20] ss:$16 sps:$4 sm:$0xff]  }
 0x101   : > { %751 = vmatprep.subr.bf16.mxu0 %v1984_v16  ;;  %v2077_v16 = vld [vmem:[#allocation7 + $0x44] ss:$16 sps:$4 sm:$0xff]  }
 0x104   : > { %752 = vmatpush1.bf16.msra.mxu0 %v1982_v17  ;;  %v2075_v17 = vld [vmem:[#allocation7 + $0x40] ss:$16 sps:$4 sm:$0xff]  }
 0x105   : > { %753 = vmatprep.subr.bf16.mxu0 %v1987_v18  ;;  %v2083_v18 = vld [vmem:[#allocation7 + $0x64] ss:$16 sps:$4 sm:$0xff]  }
 0x108   : > { %754 = vmatpush1.bf16.msra.mxu0 %v1985_v19  ;;  %v2081_v19 = vld [vmem:[#allocation7 + $0x60] ss:$16 sps:$4 sm:$0xff]  }
 0x109   : > { %755 = vmatprep.subr.bf16.mxu0 %v1990_v20  ;;  %v2089_v20 = vld [vmem:[#allocation7 + $0x84] ss:$16 sps:$4 sm:$0xff]  }
 0x10c   : > { %756 = vmatpush1.bf16.msra.mxu0 %v1988_v21  ;;  %v2087_v21 = vld [vmem:[#allocation7 + $0x80] ss:$16 sps:$4 sm:$0xff]  }
 0x10d   : > { %757 = vmatprep.subr.bf16.mxu0 %v1993_v22  ;;  %v2095_v22 = vld [vmem:[#allocation7 + $0xa4] ss:$16 sps:$4 sm:$0xff]  }
 0x110   : > { %758 = vmatpush1.bf16.msra.mxu0 %v1991_v23  ;;  %v2093_v23 = vld [vmem:[#allocation7 + $0xa0] ss:$16 sps:$4 sm:$0xff]  }
 0x111   : > { %759 = vmatprep.subr.bf16.mxu0 %v1996_v24  ;;  %v2101_v24 = vld [vmem:[#allocation7 + $0xc4] ss:$16 sps:$4 sm:$0xff]  }
 0x114   : > { %760 = vmatpush1.bf16.msra.mxu0 %v1994_v25  ;;  %v2099_v25 = vld [vmem:[#allocation7 + $0xc0] ss:$16 sps:$4 sm:$0xff]  }
 0x115   : > { %761 = vmatprep.subr.bf16.mxu0 %v1999_v26  ;;  %v2107_v26 = vld [vmem:[#allocation7 + $0xe4] ss:$16 sps:$4 sm:$0xff]  }
 0x118   : > { %762 = vmatpush1.bf16.msra.mxu0 %v1997_v27  ;;  %v2105_v27 = vld [vmem:[#allocation7 + $0xe0] ss:$16 sps:$4 sm:$0xff]  }
 0x119   : > { %763 = vmatprep.subr.bf16.mxu0 %v2002_v28  ;;  %v2113_v28 = vld [vmem:[#allocation7 + $0x104] ss:$16 sps:$4 sm:$0xff]  }
 0x11c   : > { %764 = vmatpush1.bf16.msra.mxu0 %v2000_v29  ;;  %v2111_v29 = vld [vmem:[#allocation7 + $0x100] ss:$16 sps:$4 sm:$0xff]  }
 0x11d   : > { %765 = vmatprep.subr.bf16.mxu0 %v2005_v30  ;;  %v2119_v30 = vld [vmem:[#allocation7 + $0x124] ss:$16 sps:$4 sm:$0xff]  }
 0x120   : > { %766 = vmatpush1.bf16.msra.mxu0 %v2003_v31  ;;  %v2117_v31 = vld [vmem:[#allocation7 + $0x120] ss:$16 sps:$4 sm:$0xff]  }
 0x121   : > { %767 = vmatprep.subr.bf16.mxu0 %v2008_v32  ;;  %v2125_v32 = vld [vmem:[#allocation7 + $0x144] ss:$16 sps:$4 sm:$0xff]  }
 0x124   : > { %768 = vmatpush1.bf16.msra.mxu0 %v2006_v33  ;;  %v2123_v33 = vld [vmem:[#allocation7 + $0x140] ss:$16 sps:$4 sm:$0xff]  }
 0x125   : > { %769 = vmatprep.subr.bf16.mxu0 %v2011_v34  ;;  %v2131_v34 = vld [vmem:[#allocation7 + $0x164] ss:$16 sps:$4 sm:$0xff]  }
 0x128   : > { %770 = vmatpush1.bf16.msra.mxu0 %v2009_v35  ;;  %v2129_v35 = vld [vmem:[#allocation7 + $0x160] ss:$16 sps:$4 sm:$0xff]  }
 0x129   : > { %771 = vmatprep.subr.bf16.mxu0 %v2014_v36  ;;  %v2137_v36 = vld [vmem:[#allocation7 + $0x184] ss:$16 sps:$4 sm:$0xff]  }
 0x12c   : > { %772 = vmatpush1.bf16.msra.mxu0 %v2012_v38  ;;  %v2143_v38 = vld [vmem:[#allocation7 + $0x1a4] ss:$16 sps:$4 sm:$0xff]  }
 0x12d   : > { %1480 = vmatprep.subr.bf16.mxu0 %v2068_v43  ;;  %v2150_v43 = vld [vmem:[#allocation7 + $0x1c8] ss:$16 sps:$4 sm:$0xff]  }
 0x12f   : > { %1731 = vmatmul.mubr.msk.bf16.vlgmr.msra.gmra.mrb[0].mxu0 %vm1730_vm7, %v2323_v8 }
 0x130   : > { %1481 = vmatpush1.bf16.msra.mxu0 %v2066_v42  ;;  %v2147_v42 = vld [vmem:[#allocation7 + $0x1c0] ss:$16 sps:$4 sm:$0xff]  }
 0x131   : > { %1482 = vmatprep.subr.bf16.mxu0 %v2074_v44  ;;  %v2155_v44 = vld [vmem:[#allocation7 + $0x1e4] ss:$16 sps:$4 sm:$0xff]  }
 0x134   : > { %1483 = vmatpush1.bf16.msra.mxu0 %v2072_v45  ;;  %v2158_v45 = vld [vmem:[#allocation7 + $0x1ec] ss:$16 sps:$4 sm:$0xff]  }
 0x135   : > { %1484 = vmatprep.subr.bf16.mxu0 %v2080_v46  ;;  %v2153_v46 = vld [vmem:[#allocation7 + $0x1e0] ss:$16 sps:$4 sm:$0xff]  }
 0x138   : > { %1485 = vmatpush1.bf16.msra.mxu0 %v2078_v47  ;;  %v2156_v47 = vld [vmem:[#allocation7 + $0x1e8] ss:$16 sps:$4 sm:$0xff]  }
 0x139   : > { %1486 = vmatprep.subr.bf16.mxu0 %v2086_v48  ;;  %v819_v48 = vshrl.u32 %v292_v61, 7 }
 0x13c   : > { %1487 = vmatpush1.bf16.msra.mxu0 %v2084_v49  ;;  %v820_v49 = vsub.s32 0, %v819_v48 }
 0x13d   : > { %1488 = vmatprep.subr.bf16.mxu0 %v2092_v50  ;;  %v816_v50 = vld [vmem:[%s2591_s3] sm:$0x3] }
 0x140   : > { %1489 = vmatpush1.bf16.msra.mxu0 %v2090_v51  ;;  %v824_v51 = vsub.s32 1, %v819_v48 }
 0x141   : > { %1490 = vmatprep.subr.bf16.mxu0 %v2098_v52  ;;  %v821_v52 = vrot.slane %v816_v50, %v820_v49 }
 0x144   : > { %1491 = vmatpush1.bf16.msra.mxu0 %v2096_v53  ;;  %v825_v53 = vrot.slane %v816_v50, %v824_v51 }
 0x145   : > { %1492 = vmatprep.subr.bf16.mxu0 %v2104_v54 }
 0x148   : > { %1493 = vmatpush1.bf16.msra.mxu0 %v2102_v55 }
 0x149   : > { %1494 = vmatprep.subr.bf16.mxu0 %v2110_v56 }
 0x14c   : > { %1495 = vmatpush1.bf16.msra.mxu0 %v2108_v57 }
 0x14d   : > { %1496 = vmatprep.subr.bf16.mxu0 %v2116_v58 }
 0x150   : > { %1497 = vmatpush1.bf16.msra.mxu0 %v2114_v59 }
 0x151   : > { %1498 = vmatprep.subr.bf16.mxu0 %v2122_v60 }
 0x154   : > { %1499 = vmatpush1.bf16.msra.mxu0 %v2120_v62 }
 0x155   : > { %1500 = vmatprep.subr.bf16.mxu0 %v2128_v63 }
 0x158   : > { %1501 = vmatpush1.bf16.msra.mxu0 %v2126_v0  ;;  %v1109_v0 = vsub.s32 2, %v819_v48 }
 0x159   : > { %1502 = vmatprep.subr.bf16.mxu0 %v2134_v1  ;;  %v1097_v1 = vld [vmem:[%s2593_s5] sm:$0xf] }
 0x15c   : > { %1503 = vmatpush1.bf16.msra.mxu0 %v2132_v2  ;;  %v1113_v2 = vsub.s32 3, %v819_v48 }
 0x15d   : > { %1504 = vmatprep.subr.bf16.mxu0 %v2140_v3  ;;  %v1102_v3 = vrot.slane %v1097_v1, %v820_v49 }
 0x160   : > { %1505 = vmatpush1.bf16.msra.mxu0 %v2138_v4  ;;  %v1110_v4 = vrot.slane %v1097_v1, %v1109_v0 }
 0x161   : > { %1506 = vmatprep.subr.bf16.mxu0 %v2146_v5  ;;  %v1106_v5 = vrot.slane %v1097_v1, %v824_v51 }
 0x164   : > { %1507 = vmatpush1.bf16.msra.mxu0 %v2144_v6  ;;  %v1114_v6 = vrot.slane %v1097_v1, %v1113_v2 }
 0x165   : > { %1508 = vmatprep.subr.bf16.mxu0 %v2152_v41 }
 0x168   : > { %1509 = vmatpush1.bf16.msra.mxu0 %v2150_v43 }
 0x169   : > { %1510 = vmatprep.subr.bf16.mxu0 %v2158_v45 }
 0x16c   : > { %1511 = vmatpush1.bf16.msra.mxu0 %v2156_v47 }
 0x202   : > { %v775_v7 = vpop.f32.mrb[0].mxu0 }
 0x203   : > { %v777_v8 = vpop.f32.mrb[1].mxu0  ;;  %v782_v12 = vpack.c.bf16 %v775_v7, %v775_v7 }
 0x204   : > { %v779_v9 = vpop.f32.mrb[2].mxu0  ;;  %v783_v10 = vpack.c.bf16 %v777_v8, %v777_v8 }
 0x205   : > { %v780_v13 = vpop.f32.mrb[3].mxu0 }
 0x206   : > { %1020 = vmatprep.mubr.bf16.mxu1 %v783_v10 }
 0x207   : > { %1021 = vmatmul.mubr.bf16.vlgmr.msra.gmra.mrb[0].mxu1 %v782_v12 }
 0x208   : > { %1440 = vmatpush1.bf16.msra.mxu1 %v2063_v11 }
 0x209   : > { %1441 = vmatprep.subr.bf16.mxu1 %v2071_v14 }
 0x20c   : > { %1442 = vmatpush1.bf16.msra.mxu1 %v2069_v15 }
 0x20d   : > { %1443 = vmatprep.subr.bf16.mxu1 %v2077_v16 }
 0x210   : > { %1444 = vmatpush1.bf16.msra.mxu1 %v2075_v17 }
 0x211   : > { %1445 = vmatprep.subr.bf16.mxu1 %v2083_v18 }
 0x214   : > { %1446 = vmatpush1.bf16.msra.mxu1 %v2081_v19 }
 0x215   : > { %1447 = vmatprep.subr.bf16.mxu1 %v2089_v20 }
 0x218   : > { %1448 = vmatpush1.bf16.msra.mxu1 %v2087_v21 }
 0x219   : > { %1449 = vmatprep.subr.bf16.mxu1 %v2095_v22 }
 0x21c   : > { %1450 = vmatpush1.bf16.msra.mxu1 %v2093_v23 }
 0x21d   : > { %1451 = vmatprep.subr.bf16.mxu1 %v2101_v24 }
 0x220   : > { %1452 = vmatpush1.bf16.msra.mxu1 %v2099_v25 }
 0x221   : > { %1453 = vmatprep.subr.bf16.mxu1 %v2107_v26 }
 0x224   : > { %1454 = vmatpush1.bf16.msra.mxu1 %v2105_v27 }
 0x225   : > { %1455 = vmatprep.subr.bf16.mxu1 %v2113_v28 }
 0x228   : > { %1456 = vmatpush1.bf16.msra.mxu1 %v2111_v29 }
 0x229   : > { %1457 = vmatprep.subr.bf16.mxu1 %v2119_v30 }
 0x22c   : > { %1458 = vmatpush1.bf16.msra.mxu1 %v2117_v31 }
 0x22d   : > { %1459 = vmatprep.subr.bf16.mxu1 %v2125_v32 }
 0x230   : > { %1460 = vmatpush1.bf16.msra.mxu1 %v2123_v33 }
 0x231   : > { %1461 = vmatprep.subr.bf16.mxu1 %v2131_v34 }
 0x234   : > { %1462 = vmatpush1.bf16.msra.mxu1 %v2129_v35 }
 0x235   : > { %1463 = vmatprep.subr.bf16.mxu1 %v2137_v36 }
 0x238   : > { %1464 = vmatpush1.bf16.msra.mxu1 %v2135_v37 }
 0x239   : > { %1465 = vmatprep.subr.bf16.mxu1 %v2143_v38 }
 0x23c   : > { %1466 = vmatpush1.bf16.msra.mxu1 %v2141_v39 }
 0x23d   : > { %1467 = vmatprep.subr.bf16.mxu1 %v2149_v40 }
 0x240   : > { %1468 = vmatpush1.bf16.msra.mxu1 %v2147_v42 }
 0x241   : > { %1469 = vmatprep.subr.bf16.mxu1 %v2155_v44 }
 0x244   : > { %1470 = vmatpush1.bf16.msra.mxu1 %v2153_v46 }
 0x2da   : > { %v1022_v54 = vpop.f32.mrb[0].mxu1 }
 0x2db   : > { %v1023_v55 = vadd.f32 %v1022_v54, %v821_v52  ;;  %v1024_v56 = vpop.f32.mrb[1].mxu1 }
 0x2dc   : > { %v1025_v57 = vadd.f32 %v1024_v56, %v825_v53  ;;  %v1026_v58 = vpop.f32.mrb[2].mxu1 }
 0x2dd   : > { %v1029_v59 = vmax.f32 %v1023_v55, 0.0  ;;  %v1027_v60 = vpop.f32.mrb[3].mxu1 }
 0x2de   : > { %v1030_v62 = vmax.f32 %v1025_v57, 0.0 }
 0x2df   : > { %v1031_v61 = vpack.c.bf16 %v1029_v59, %v1029_v59 }
 0x2e0   : > { %v1032_v63 = vpack.c.bf16 %v1030_v62, %v1030_v62 }
 0x2e2   : > { %1471 = vmatprep.mubr.bf16.mxu1 %v1032_v63  ;;  %1512 = vmatprep.mubr.bf16.mxu0 %v1032_v63 }
 0x2e3   : > { %1472 = vmatmul.mubr.bf16.vlgmr.msra.gmra.mrb[4].mxu1 %v1031_v61  ;;  %1513 = vmatmul.mubr.bf16.vlgmr.msra.gmra.mrb[4].mxu0 %v1031_v61 }
 0x3b6   : > { %v1473_v7 = vpop.f32.mrb[4].mxu1  ;;  %v1514_v8 = vpop.f32.mrb[4].mxu0 }
 0x3b7   : > { %v1474_v9 = vadd.f32 %v1473_v7, %v1102_v3  ;;  %v1515_v10 = vadd.f32 %v1514_v8, %v1110_v4  ;;  %v1475_v11 = vpop.f32.mrb[5].mxu1  ;;  %v1516_v12 = vpop.f32.mrb[5].mxu0 }
 0x3b8   : > { %v1476_v13 = vadd.f32 %v1475_v11, %v1106_v5  ;;  %v1517_v14 = vadd.f32 %v1516_v12, %v1114_v6  ;;  %v1477_v15 = vpop.f32.mrb[6].mxu1  ;;  %v1518_v16 = vpop.f32.mrb[6].mxu0 }
 0x3b9   : > { %v1478_v17 = vpop.f32.mrb[7].mxu1  ;;  %v1519_v18 = vpop.f32.mrb[7].mxu0 }
 0x3ba   : > { %v1835_v19 = vpack.c.bf16 %v1476_v13, %v1474_v9  ;;  %v1836_v20 = vpack.c.bf16 %v1517_v14, %v1515_v10 }
 0x3bc   : > { %1537 = vst [vmem:[%s286_s11] sm:$0xff] %v1835_v19  ;;  %1538 = vst [vmem:[%s286_s11 + $0x8] sm:$0xff] %v1836_v20 }
 0x3bd   : > { %2256 = shalt.err (!%p2253_p9)
}
 0x3be   : > { %s2257_s30 = scalar_lea.hbm %s2544_s23, 256  ;;  %s2261_s20 = scalar_lea.hbm %s2594_s6, 512 }
 0x3bf   : > { %p2258_p2 = scmp.ne.s32.totalorder %s2544_s23, %s2257_s30  ;;  %p2262_p5 = scmp.lt.u32.totalorder %s2544_s23, %s2594_s6 }
 0x3c0   : > { %p2263_p10 = scmp.lt.u32.totalorder %s2261_s20, %s2257_s30  ;;  %p2265_p12 = scmp.lt.u32.totalorder %s2257_s30, %s2544_s23 }
 0x3c1   : > { %p2259_p3 = pnand %p2258_p2, %p2611_p7 }
 0x3c2   : > { %p2264_p4 = por %p2263_p10, %p2262_p5 }
 0x3c3   : > { %p2260_p0 = pneg %p2259_p3 }
 0x3c4   : > { %p2266_p8 = por %p2265_p12, %p2264_p4 }
 0x3c6   : > { %p2267_p11 = pnand %p2266_p8, %p2260_p0 }
 0x3c8   : > { %2270 = shalt.err (!%p2267_p11)
}
 0x3c9   : > { %1854 = dma.vmem_to_hbm [thread:$0]  (%p2611_p7), %s2546_s14, 256, %s2544_s23, %s1540_s25  }
 0x3ca PF: > { %p1876_p13 = scmp.ge.s32.totalorder %s2313_s24, 2  ;;  %s1566_s10 = sand.u32 1, %s2301_s21  }
 0x3cb   : > { %p2612_p1 = scmp.ne.s32.totalorder %s2602_s8, 0  ;;  %s1567_s13 = scalar_lea.sflag [#allocation4], %s1566_s10 }
 0x3cd   : > { %p1867_p6 = pnand %p1876_p13, %p2612_p1 }
 0x3cf   : > { %2296 = dma.done.wait (!%p1867_p6), %s1567_s13, 256  }
 0x3d0   : > { %2298 = vsyncadd (!%p1867_p6), %s1567_s13, 4294967040  ;;  %s2613_s11 = sld [smem:[#allocation12_spill]]  ;;  %s2614_s23 = sld [smem:[#allocation13_spill]] }
 0x3d1   : > { %p18_p9 = scmp.ge.s32.totalorder %s2385_s27, 4   ;;  %s2615_s21 = smov %s2305_s22 }
 0x3d2   : > { %s2617_s24 = smov %s2385_s27 }
 0x3d3   :  { %20 = sbr.rel (!%p18_p9) target bundleno = 5 (0x5), region = 92 }
 0x3d6   : > { %s2616_s22 = smov %s2613_s11 }
 0x3da   :  { %1572 = vsyncpa [#allocation3], 1 }
 0x3db   :  { %1574 = vsyncpa [#allocation3 + $0x1], 1 }
 0x3dc   :  { %1575 = vsyncpa [#allocation6], 1 }
 0x3dd   :  { %1576 = vsyncpa [#allocation4], 1 }
 0x3de   :  { %1578 = vsyncpa [#allocation4 + $0x1], 1 }

// kernel: tpu_custom_call.1
= control target key start
LH: loop header
LB: loop body
LE: loop exit
PB: predicated region body
PF: predicated region fallthrough
CT: control target
= control target key end

     0   :  { %11 = vsyncpa [#allocation3], 0  ;;  %s2588_s0 = inlined_call_operand.vmem [shape: s32[16,1], index: 0, kind: input, shape index: {}]   ;;  %s2589_s1 = inlined_call_operand.hbm [shape: bf16[512,256], index: 1, kind: input, shape index: {}]   ;;  %s2590_s2 = inlined_call_operand.hbm [shape: bf16[256,256], index: 2, kind: input, shape index: {}]   ;;  %s2591_s3 = inlined_call_operand.vmem [shape: f32[1,256], index: 3, kind: input, shape index: {}]   ;;  %s2592_s4 = inlined_call_operand.hbm [shape: bf16[256,512], index: 4, kind: input, shape index: {}]   ;;  %s2593_s5 = inlined_call_operand.vmem [shape: f32[1,512], index: 5, kind: input, shape index: {}]   ;;  %s2594_s6 = inlined_call_operand.hbm [shape: bf16[16,512], index: 6, kind: output, shape index: {}]  }
   0x1   :  { %12 = vsyncpa [#allocation6], 0 }
   0x2   :  { %13 = vsyncpa [#allocation4], 0 }
   0x3   :  { %15 = vsyncpa [#allocation4 + $0x1], 0  ;;  %s2360_s21 = smov 0   ;;  %s2362_s22 = smov 0  }
   0x4   :  { %s2364_s23 = smov 0   ;;  %s2366_s24 = smov 0  }
   0x5 LB: > { %2599 = sst [smem:[#allocation12_spill]] %s2309_s23  ;;  %s2381_s25 = sadd.s32 4294967295, %s2313_s24   ;;  %s2313_s24 = sphi %s2366_s24, %s2617_s24   ;;  %s2309_s23 = sphi %s2364_s23, %s2614_s23   ;;  %s2305_s22 = sphi %s2362_s22, %s2616_s22   ;;  %s2301_s21 = sphi %s2360_s21, %s2615_s21  }
   0x6   : > { %s1644_s26 = sadd.s32 4294967294, %s2313_s24   ;;  %s2385_s27 = sadd.s32 1, %s2313_s24  }
   0x7   : > { %s159_s28 = sadd.s32 1, %s2309_s23  ;;  %s156_s29 = ssub.s32 %s2313_s24, %s2385_s27 }
   0x8   : > { %p169_p0 = scmp.ne.s32.totalorder %s2309_s23, %s2305_s22  ;;  %p157_p1 = scmp.eq.s32.totalorder %s156_s29, 0 }
   0x9   : > { %p170_p2 = scmp.eq.s32.totalorder %s2381_s25, 1  ;;  %p175_p3 = scmp.ne.s32.totalorder %s2305_s22, %s2301_s21 }
   0xa   : > { %p176_p4 = scmp.eq.s32.totalorder %s1644_s26, 1  ;;  %p1645_p7 = scmp.ge.s32.totalorder %s2313_s24, 1 }
   0xb   : > { %s2396_s30 = scalar_select %p157_p1, %s2309_s23, %s159_s28  }
   0xc   : > { %p2398_p5 = por %p170_p2, %p169_p0  ;;  %p2402_p6 = por %p176_p4, %p175_p3 }
   0xd   : > { %2600 = sst [smem:[#allocation13_spill]] %s2396_s30  ;;  %p183_p8 = scmp.lt.s32.totalorder %s2313_s24, 3 }
   0xe   : > { %s2601_s7 = scalar_select %p2398_p5, 1, 0 }
   0xf   : > { %s2602_s8 = scalar_select %p2402_p6, 1, 0 }
  0x10   : > { %p2595_p9 = scmp.eq.s32.totalorder %s2381_s25, 0  ;;  %p2409_p10 = pnand %p1645_p7, %p183_p8 }
  0x11   : > { %s2315_s10 = smov [#allocation5]   ;;  %s2316_s13 = smov [#allocation2]  }
  0x12   : > { %s2603_s9 = scalar_select %p2409_p10, 1, 0 }
  0x13   : > { %p1856_p11 = pneg %p2409_p10  ;;  %s208_s11 = sshll.u32 %s2315_s10, 4  ;;  %s2415_s11 = int_to_ptr.vmem [resolvable:$true] %s208_s11 }
  0x14   : > { %s195_s14 = sshll.u32 %s2316_s13, 4  ;;  %s2317_s15 = smov [#allocation7]   ;;  %s2423_s14 = int_to_ptr.vmem [resolvable:$true] %s195_s14 }
  0x15   : > { %p2419_p12 = pnand %p2595_p9, %p1856_p11  ;;  %s2425_s16 = sshll.u32 %s2317_s15, 4  ;;  %s225_s16 = int_to_ptr.vmem [resolvable:$true] %s2425_s16 }
  0x16   : > { %s2159_s19 = scalar_lea.hbm %s2590_s2, 4096 }
  0x17   : > { %p2160_p13 = scmp.ne.s32.totalorder %s2590_s2, %s2159_s19  ;;  %p2435_p0 = pneg %p2419_p12 }
  0x18   : > { %p2166_p3 = scmp.lt.u32.totalorder %s2159_s19, %s2590_s2 }
  0x19   : > { %p2162_p1 = pnand %p2435_p0, %p2160_p13 }
  0x1b   : > { %p2163_p2 = pneg %p2162_p1 }
  0x1d   : > { %p2168_p4 = pnand %p2166_p3, %p2163_p2 }
  0x1f   : > { %2171 = shalt.err (!%p2168_p4)
}
  0x20   : > { %s2172_s13 = scalar_lea.vmem %s2415_s11, 4096  ;;  %p2180_p9 = scmp.lt.s32.totalorder %s2415_s11, %s2415_s11 }
  0x21   : > { %p2173_p7 = scmp.ne.s32.totalorder %s2415_s11, %s2172_s13  ;;  %p2181_p6 = scmp.lt.s32.totalorder %s2172_s13, %s2172_s13 }
  0x23   : > { %p2175_p8 = pnand %p2173_p7, %p2435_p0  ;;  %p2182_p13 = por %p2181_p6, %p2180_p9 }
  0x25   : > { %p2176_p11 = pneg %p2175_p8 }
  0x27   : > { %p2183_p1 = pnand %p2182_p13, %p2176_p11 }
  0x29   : > { %2186 = shalt.err (!%p2183_p1)
}
  0x2a   : > { %s2318_s15 = smov 128   ;;  %s2319_s17 = smov 8  }
  0x2b   : > { %1862 = dma.hbm_to_vmem [thread:$0]  (!%p2419_p12), %s2590_s2, 4096, %s2415_s11, [#allocation6], %s2318_s15, %s2318_s15, %s2319_s17  }
  0x2c   : > { %s2187_s29 = scalar_lea.hbm %s2589_s1, 8192 }
  0x2d   : > { %p2188_p6 = scmp.ne.s32.totalorder %s2589_s1, %s2187_s29  ;;  %p2194_p3 = scmp.lt.u32.totalorder %s2187_s29, %s2589_s1 }
  0x2f   : > { %p2190_p9 = pnand %p2188_p6, %p2435_p0 }
  0x31   : > { %p2191_p2 = pneg %p2190_p9 }
  0x33   : > { %p2196_p4 = pnand %p2194_p3, %p2191_p2 }
  0x35   : > { %2199 = shalt.err (!%p2196_p4)
}
  0x36   : > { %s2200_s11 = scalar_lea.vmem %s2423_s14, 8192  ;;  %p2208_p13 = scmp.lt.s32.totalorder %s2423_s14, %s2423_s14 }
  0x37   : > { %p2201_p7 = scmp.ne.s32.totalorder %s2423_s14, %s2200_s11  ;;  %p2209_p1 = scmp.lt.s32.totalorder %s2200_s11, %s2200_s11 }
  0x39   : > { %p2203_p8 = pnand %p2201_p7, %p2435_p0  ;;  %p2210_p6 = por %p2209_p1, %p2208_p13 }
  0x3b   : > { %p2204_p11 = pneg %p2203_p8 }
  0x3d   : > { %p2211_p9 = pnand %p2210_p6, %p2204_p11 }
  0x3f   : > { %2214 = shalt.err (!%p2211_p9)
}
  0x40   : > { %1859 = dma.hbm_to_vmem [thread:$0]  (!%p2419_p12), %s2589_s1, 8192, %s2423_s14, [#allocation3], %s2318_s15, %s2318_s15, %s2319_s17  }
  0x41   : > { %s2215_s20 = scalar_lea.hbm %s2592_s4, 8192 }
  0x42   : > { %p2216_p2 = scmp.ne.s32.totalorder %s2592_s4, %s2215_s20  ;;  %p2222_p7 = scmp.lt.u32.totalorder %s2215_s20, %s2592_s4 }
  0x44   : > { %p2218_p3 = pnand %p2216_p2, %p2435_p0 }
  0x46   : > { %p2219_p4 = pneg %p2218_p3 }
  0x48   : > { %p2224_p8 = pnand %p2222_p7, %p2219_p4 }
  0x4a   : > { %2227 = shalt.err (!%p2224_p8)
}
  0x4b   : > { %s2228_s11 = scalar_lea.vmem %s225_s16, 8192  ;;  %p2236_p6 = scmp.lt.s32.totalorder %s225_s16, %s225_s16 }
  0x4c   : > { %p2229_p11 = scmp.ne.s32.totalorder %s225_s16, %s2228_s11  ;;  %p2237_p9 = scmp.lt.s32.totalorder %s2228_s11, %s2228_s11 }
  0x4e   : > { %p2231_p13 = pnand %p2229_p11, %p2435_p0  ;;  %p2238_p5 = por %p2237_p9, %p2236_p6 }
  0x50   : > { %p2232_p1 = pneg %p2231_p13 }
  0x52   : > { %p2239_p10 = pnand %p2238_p5, %p2232_p1 }
  0x54   : > { %2242 = shalt.err (!%p2239_p10)
}
  0x55   : > { %s2320_s14 = smov 256   ;;  %s2321_s15 = smov 16  }
  0x56   : > { %1865 = dma.hbm_to_vmem [thread:$0]  (!%p2419_p12), %s2592_s4, 8192, %s225_s16, [#allocation6], %s2320_s14, %s2320_s14, %s2321_s15  }
  0x57   : > { %p2606_p2 = scmp.ne.s32.totalorder %s2603_s9, 0 }
  0x58   : > { %p2607_p3 = scmp.eq.s32.totalorder (!%p2606_p2), %s2381_s25, 0 }
  0x59   : > { %250 = sbr.rel (%p2606_p2) target bundleno = 970 (0x3ca), region = 44 }
  0x60   : > { %2288 = dma.done.wait (%p2607_p3), [#allocation3], 8192   ;;  %p2608_p0 = pmov %p2607_p3 }
  0x62   : > { %2290 = vsyncadd (%p2608_p0), [#allocation3], 4294959104  ;;  %p2609_p5 = pmov %p2608_p0 }
  0x63   : > { %p2610_p10 = pmov %p2608_p0 }
  0x64   : > { %2292 = dma.done.wait (%p2609_p5), [#allocation6], 12288  }
  0x65   : > { %2294 = vsyncadd (%p2610_p10), [#allocation6], 4294955008  ;;  %p287_p4 = scmp.lt.s32.totalorder %s2381_s25, 1  ;;  %v2322_v0 = vmov 0   ;;  %v1919_v2 = vld [vmem:[#allocation2 + $0x4] ss:$8 sps:$4 sm:$0xff]   ;;  %v292_v61 = vlaneseq }
  0x66   : > { %1918 = vset.pattern.permute.xlu0 %v2322_v0  ;;  %v1921_v3 = vld [vmem:[#allocation2] ss:$8 sps:$4 sm:$0xff]   ;;  %v1922_v4 = vld [vmem:[#allocation2 + $0x14] ss:$8 sps:$4 sm:$0xff]   ;;  %700 = vmatprep.subr.bf16.mxu0 %v1919_v2  ;;  %v1924_v5 = vld [vmem:[#allocation2 + $0x10] ss:$8 sps:$4 sm:$0xff]  }
  0x67   : > { %s288_s12 = scalar_select %p287_p4, %s2381_s25, 1  ;;  %701 = vmatpush1.bf16.msra.mxu0 %v1921_v3  ;;  %v1925_v6 = vld [vmem:[#allocation2 + $0x24] ss:$8 sps:$4 sm:$0xff]   ;;  %v1927_v7 = vld [vmem:[#allocation2 + $0x20] ss:$8 sps:$4 sm:$0xff]   ;;  %v2514_v0 = vand.u32 127, %v292_v61 }
  0x68   : > { %702 = vmatprep.subr.bf16.mxu0 %v1922_v4  ;;  %v1928_v8 = vld [vmem:[#allocation2 + $0x34] ss:$8 sps:$4 sm:$0xff]   ;;  %v1930_v9 = vld [vmem:[#allocation2 + $0x30] ss:$8 sps:$4 sm:$0xff]   ;;  %v1931_v10 = vld [vmem:[#allocation2 + $0x44] ss:$8 sps:$4 sm:$0xff]  }
  0x69   : > { %s1655_s9 = sshll.u32 %s288_s12, 3  ;;  %v1933_v11 = vld [vmem:[#allocation2 + $0x40] ss:$8 sps:$4 sm:$0xff]   ;;  %v1934_v12 = vld [vmem:[#allocation2 + $0x54] ss:$8 sps:$4 sm:$0xff]   ;;  %v294_v3 = vadd.s32 128, %v2514_v0 }
  0x6a   : > { %s290_s30 = scalar_lea.vmem %s2588_s0, %s1655_s9  ;;  %v1936_v13 = vld [vmem:[#allocation2 + $0x50] ss:$8 sps:$4 sm:$0xff]   ;;  %v1937_v14 = vld [vmem:[#allocation2 + $0x64] ss:$8 sps:$4 sm:$0xff]   ;;  %v1939_v15 = vld [vmem:[#allocation2 + $0x60] ss:$8 sps:$4 sm:$0xff]  }
  0x6b   : > { %v291_v1 = vld [vmem:[%s290_s30] sm:$0xff]  ;;  %703 = vmatpush1.bf16.msra.mxu0 %v1924_v5  ;;  %v1940_v16 = vld [vmem:[#allocation2 + $0x74] ss:$8 sps:$4 sm:$0xff]   ;;  %v1942_v17 = vld [vmem:[#allocation2 + $0x70] ss:$8 sps:$4 sm:$0xff]   ;;  %v296_v4 = vadd.s32 384, %v2514_v0 }
  0x6c   : > { %298 = vperm.xlu0 %1918, %v291_v1   ;;  %704 = vmatprep.subr.bf16.mxu0 %v1925_v6  ;;  %v1943_v18 = vld [vmem:[#allocation2 + $0x84] ss:$8 sps:$4 sm:$0xff]   ;;  %v1945_v19 = vld [vmem:[#allocation2 + $0x80] ss:$8 sps:$4 sm:$0xff]   ;;  %v1946_v20 = vld [vmem:[#allocation2 + $0x94] ss:$8 sps:$4 sm:$0xff]  }
  0x6d   : > { %v1948_v21 = vld [vmem:[#allocation2 + $0x90] ss:$8 sps:$4 sm:$0xff]   ;;  %v1949_v22 = vld [vmem:[#allocation2 + $0xa4] ss:$8 sps:$4 sm:$0xff]   ;;  %v1951_v23 = vld [vmem:[#allocation2 + $0xa0] ss:$8 sps:$4 sm:$0xff]  }
  0x6e   : > { %v1952_v24 = vld [vmem:[#allocation2 + $0xb4] ss:$8 sps:$4 sm:$0xff]   ;;  %v1954_v25 = vld [vmem:[#allocation2 + $0xb0] ss:$8 sps:$4 sm:$0xff]   ;;  %v1955_v26 = vld [vmem:[#allocation2 + $0xc4] ss:$8 sps:$4 sm:$0xff]  }
  0x6f   : > { %705 = vmatpush1.bf16.msra.mxu0 %v1927_v7  ;;  %v1957_v27 = vld [vmem:[#allocation2 + $0xc0] ss:$8 sps:$4 sm:$0xff]   ;;  %v1958_v28 = vld [vmem:[#allocation2 + $0xd4] ss:$8 sps:$4 sm:$0xff]   ;;  %v1960_v29 = vld [vmem:[#allocation2 + $0xd0] ss:$8 sps:$4 sm:$0xff]  }
  0x70   : > { %706 = vmatprep.subr.bf16.mxu0 %v1928_v8  ;;  %v1961_v30 = vld [vmem:[#allocation2 + $0xe4] ss:$8 sps:$4 sm:$0xff]   ;;  %v1963_v31 = vld [vmem:[#allocation2 + $0xe0] ss:$8 sps:$4 sm:$0xff]   ;;  %v1964_v32 = vld [vmem:[#allocation2 + $0xf4] ss:$8 sps:$4 sm:$0xff]  }
  0x71   : > { %v1966_v33 = vld [vmem:[#allocation2 + $0xf0] ss:$8 sps:$4 sm:$0xff]   ;;  %v1969_v34 = vld [vmem:[#allocation2 + $0x104] ss:$8 sps:$4 sm:$0xff]   ;;  %v2017_v36 = vld [vmem:[#allocation5] ss:$8 sps:$4 sm:$0xff]  }
  0x72   : > { %v2015_v35 = vld [vmem:[#allocation5 + $0x4] ss:$8 sps:$4 sm:$0xff]   ;;  %v2018_v37 = vld [vmem:[#allocation5 + $0x14] ss:$8 sps:$4 sm:$0xff]   ;;  %v2020_v38 = vld [vmem:[#allocation5 + $0x10] ss:$8 sps:$4 sm:$0xff]  }
  0x73   : > { %707 = vmatpush1.bf16.msra.mxu0 %v1930_v9  ;;  %988 = vmatprep.subr.bf16.mxu1 %v2015_v35  ;;  %v2021_v39 = vld [vmem:[#allocation5 + $0x24] ss:$8 sps:$4 sm:$0xff]   ;;  %v2023_v40 = vld [vmem:[#allocation5 + $0x20] ss:$8 sps:$4 sm:$0xff]   ;;  %v2024_v41 = vld [vmem:[#allocation5 + $0x34] ss:$8 sps:$4 sm:$0xff]  }
  0x74   : > { %708 = vmatprep.subr.bf16.mxu0 %v1931_v10  ;;  %989 = vmatpush1.bf16.msra.mxu1 %v2017_v36  ;;  %v2026_v42 = vld [vmem:[#allocation5 + $0x30] ss:$8 sps:$4 sm:$0xff]   ;;  %v2027_v43 = vld [vmem:[#allocation5 + $0x44] ss:$8 sps:$4 sm:$0xff]   ;;  %v2029_v44 = vld [vmem:[#allocation5 + $0x40] ss:$8 sps:$4 sm:$0xff]  }
  0x75   : > { %990 = vmatprep.subr.bf16.mxu1 %v2018_v37  ;;  %v2030_v45 = vld [vmem:[#allocation5 + $0x54] ss:$8 sps:$4 sm:$0xff]   ;;  %v2032_v46 = vld [vmem:[#allocation5 + $0x50] ss:$8 sps:$4 sm:$0xff]   ;;  %v2033_v47 = vld [vmem:[#allocation5 + $0x64] ss:$8 sps:$4 sm:$0xff]  }
  0x76   : > { %v2035_v48 = vld [vmem:[#allocation5 + $0x60] ss:$8 sps:$4 sm:$0xff]   ;;  %v2036_v49 = vld [vmem:[#allocation5 + $0x74] ss:$8 sps:$4 sm:$0xff]   ;;  %v2038_v50 = vld [vmem:[#allocation5 + $0x70] ss:$8 sps:$4 sm:$0xff]  }
  0x77   : > { %709 = vmatpush1.bf16.msra.mxu0 %v1933_v11  ;;  %v2039_v51 = vld [vmem:[#allocation5 + $0x84] ss:$8 sps:$4 sm:$0xff]   ;;  %v2041_v52 = vld [vmem:[#allocation5 + $0x80] ss:$8 sps:$4 sm:$0xff]   ;;  %v2042_v53 = vld [vmem:[#allocation5 + $0x94] ss:$8 sps:$4 sm:$0xff]  }
  0x78   : > { %710 = vmatprep.subr.bf16.mxu0 %v1934_v12  ;;  %991 = vmatpush1.bf16.msra.mxu1 %v2020_v38  ;;  %v2044_v54 = vld [vmem:[#allocation5 + $0x90] ss:$8 sps:$4 sm:$0xff]   ;;  %v2045_v55 = vld [vmem:[#allocation5 + $0xa4] ss:$8 sps:$4 sm:$0xff]   ;;  %v2047_v56 = vld [vmem:[#allocation5 + $0xa0] ss:$8 sps:$4 sm:$0xff]  }
  0x79   : > { %992 = vmatprep.subr.bf16.mxu1 %v2021_v39  ;;  %v2048_v57 = vld [vmem:[#allocation5 + $0xb4] ss:$8 sps:$4 sm:$0xff]   ;;  %v2050_v58 = vld [vmem:[#allocation5 + $0xb0] ss:$8 sps:$4 sm:$0xff]   ;;  %v2051_v59 = vld [vmem:[#allocation5 + $0xc4] ss:$8 sps:$4 sm:$0xff]  }
  0x7a   : > { %v2053_v60 = vld [vmem:[#allocation5 + $0xc0] ss:$8 sps:$4 sm:$0xff]   ;;  %v2054_v62 = vld [vmem:[#allocation5 + $0xd4] ss:$8 sps:$4 sm:$0xff]   ;;  %v2056_v63 = vld [vmem:[#allocation5 + $0xd0] ss:$8 sps:$4 sm:$0xff]  }
  0x7b   : > { %711 = vmatpush1.bf16.msra.mxu0 %v1936_v13  ;;  %v2057_v1 = vld [vmem:[#allocation5 + $0xe4] ss:$8 sps:$4 sm:$0xff]   ;;  %v2059_v2 = vld [vmem:[#allocation5 + $0xe0] ss:$8 sps:$4 sm:$0xff]   ;;  %v1972_v7 = vld [vmem:[#allocation2 + $0x114] ss:$8 sps:$4 sm:$0xff]  }
  0x7c   : > { %712 = vmatprep.subr.bf16.mxu0 %v1937_v14  ;;  %993 = vmatpush1.bf16.msra.mxu1 %v2023_v40  ;;  %v1967_v6 = vld [vmem:[#allocation2 + $0x100] ss:$8 sps:$4 sm:$0xff]   ;;  %v2323_v8 = vmov 1.0|1.0   ;;  %v1970_v9 = vld [vmem:[#allocation2 + $0x110] ss:$8 sps:$4 sm:$0xff]  }
  0x7d   : > { %994 = vmatprep.subr.bf16.mxu1 %v2024_v41  ;;  %v1975_v10 = vld [vmem:[#allocation2 + $0x124] ss:$8 sps:$4 sm:$0xff]   ;;  %v1973_v11 = vld [vmem:[#allocation2 + $0x120] ss:$8 sps:$4 sm:$0xff]   ;;  %v1978_v12 = vld [vmem:[#allocation2 + $0x134] ss:$8 sps:$4 sm:$0xff]  }
  0x7e   : > { %v1976_v13 = vld [vmem:[#allocation2 + $0x130] ss:$8 sps:$4 sm:$0xff]   ;;  %v1981_v14 = vld [vmem:[#allocation2 + $0x144] ss:$8 sps:$4 sm:$0xff]   ;;  %v2009_v35 = vld [vmem:[#allocation2 + $0x1e0] ss:$8 sps:$4 sm:$0xff]  }
  0x7f   : > { %713 = vmatpush1.bf16.msra.mxu0 %v1939_v15  ;;  %v1979_v15 = vld [vmem:[#allocation2 + $0x140] ss:$8 sps:$4 sm:$0xff]   ;;  %v2014_v36 = vld [vmem:[#allocation2 + $0x1f4] ss:$8 sps:$4 sm:$0xff]   ;;  %v295_v37 = vadd.s32 256, %v2514_v0  ;;  %s284_s20 = sand.u32 1, %s2305_s22  }
  0x80   : > { %714 = vmatprep.subr.bf16.mxu0 %v1940_v16  ;;  %995 = vmatpush1.bf16.msra.mxu1 %v2026_v42  ;;  %v1984_v16 = vld [vmem:[#allocation2 + $0x154] ss:$8 sps:$4 sm:$0xff]   ;;  %v2012_v38 = vld [vmem:[#allocation2 + $0x1f0] ss:$8 sps:$4 sm:$0xff]   ;;  %s1654_s10 = sshll.u32 %s284_s20, 4  ;;  %s1837_s13 = sshll.u32 %s2381_s25, 8 }
  0x81   : > { %996 = vmatprep.subr.bf16.mxu1 %v2027_v43  ;;  %v2060_v39 = vld [vmem:[#allocation5 + $0xf4] ss:$8 sps:$4 sm:$0xff]   ;;  %v2062_v40 = vld [vmem:[#allocation5 + $0xf0] ss:$8 sps:$4 sm:$0xff]   ;;  %s286_s11 = scalar_lea.vmem [#allocation8], %s1654_s10  ;;  %s2544_s23 = scalar_lea.hbm %s2594_s6, %s1837_s13 }
  0x82   : > { %v2065_v41 = vld [vmem:[#allocation7 + $0x4] ss:$16 sps:$4 sm:$0xff]   ;;  %v2066_v42 = vld [vmem:[#allocation7 + $0x8] ss:$16 sps:$4 sm:$0xff]   ;;  %v2068_v43 = vld [vmem:[#allocation7 + $0xc] ss:$16 sps:$4 sm:$0xff]  }
  0x83   : > { %715 = vmatpush1.bf16.msra.mxu0 %v1942_v17  ;;  %v1982_v17 = vld [vmem:[#allocation2 + $0x150] ss:$8 sps:$4 sm:$0xff]   ;;  %s1554_s14 = sshll.u32 %s286_s11, 4  ;;  %s1540_s25 = scalar_lea.sflag [#allocation4], %s284_s20  ;;  %s2546_s14 = int_to_ptr.vmem [resolvable:$true] %s1554_s14 }
  0x84   : > { %716 = vmatprep.subr.bf16.mxu0 %v1943_v18  ;;  %997 = vmatpush1.bf16.msra.mxu1 %v2029_v44  ;;  %v1987_v18 = vld [vmem:[#allocation2 + $0x164] ss:$8 sps:$4 sm:$0xff]   ;;  %s2243_s12 = scalar_lea.vmem %s2546_s14, 256  ;;  %p2611_p7 = scmp.ne.s32.totalorder %s2601_s7, 0 }
  0x85   : > { %998 = vmatprep.subr.bf16.mxu1 %v2030_v45  ;;  %v2074_v44 = vld [vmem:[#allocation7 + $0x2c] ss:$16 sps:$4 sm:$0xff]   ;;  %v2072_v45 = vld [vmem:[#allocation7 + $0x28] ss:$16 sps:$4 sm:$0xff]   ;;  %p2244_p12 = scmp.ne.s32.totalorder %s2546_s14, %s2243_s12  ;;  %s2324_s9 = smov [#allocation8]  }
  0x86   : > { %s2247_s16 = sshll.u32 %s2324_s9, 4  ;;  %s2248_s16 = int_to_ptr.vmem [resolvable:$false] %s2247_s16 }
  0x87   : > { %717 = vmatpush1.bf16.msra.mxu0 %v1945_v19  ;;  %v1985_v19 = vld [vmem:[#allocation2 + $0x160] ss:$8 sps:$4 sm:$0xff]   ;;  %p2245_p8 = pnand %p2244_p12, %p2611_p7  ;;  %s2249_s28 = scalar_lea.vmem %s2248_s16, 512 }
  0x88   : > { %718 = vmatprep.subr.bf16.mxu0 %v1946_v20  ;;  %999 = vmatpush1.bf16.msra.mxu1 %v2032_v46  ;;  %v1990_v20 = vld [vmem:[#allocation2 + $0x174] ss:$8 sps:$4 sm:$0xff]   ;;  %p2250_p13 = scmp.lt.s32.totalorder %s2546_s14, %s2248_s16  ;;  %p2251_p1 = scmp.lt.s32.totalorder %s2249_s28, %s2243_s12 }
  0x89   : > { %1000 = vmatprep.subr.bf16.mxu1 %v2033_v47  ;;  %v2080_v46 = vld [vmem:[#allocation7 + $0x4c] ss:$16 sps:$4 sm:$0xff]   ;;  %v2078_v47 = vld [vmem:[#allocation7 + $0x48] ss:$16 sps:$4 sm:$0xff]   ;;  %p2246_p11 = pneg %p2245_p8 }
  0x8a   : > { %p2252_p6 = por %p2251_p1, %p2250_p13 }
  0x8b   : > { %719 = vmatpush1.bf16.msra.mxu0 %v1948_v21  ;;  %v1988_v21 = vld [vmem:[#allocation2 + $0x170] ss:$8 sps:$4 sm:$0xff]  }
  0x8c   : > { %720 = vmatprep.subr.bf16.mxu0 %v1949_v22  ;;  %1001 = vmatpush1.bf16.msra.mxu1 %v2035_v48  ;;  %v1993_v22 = vld [vmem:[#allocation2 + $0x184] ss:$8 sps:$4 sm:$0xff]   ;;  %p2253_p9 = pnand %p2252_p6, %p2246_p11 }
  0x8d   : > { %1002 = vmatprep.subr.bf16.mxu1 %v2036_v49  ;;  %v2086_v48 = vld [vmem:[#allocation7 + $0x6c] ss:$16 sps:$4 sm:$0xff]   ;;  %v2084_v49 = vld [vmem:[#allocation7 + $0x68] ss:$16 sps:$4 sm:$0xff]  }
  0x8f   : > { %721 = vmatpush1.bf16.msra.mxu0 %v1951_v23  ;;  %v1991_v23 = vld [vmem:[#allocation2 + $0x180] ss:$8 sps:$4 sm:$0xff]  }
  0x90   : > { %722 = vmatprep.subr.bf16.mxu0 %v1952_v24  ;;  %1003 = vmatpush1.bf16.msra.mxu1 %v2038_v50  ;;  %v1996_v24 = vld [vmem:[#allocation2 + $0x194] ss:$8 sps:$4 sm:$0xff]  }
  0x91   : > { %1004 = vmatprep.subr.bf16.mxu1 %v2039_v51  ;;  %v2092_v50 = vld [vmem:[#allocation7 + $0x8c] ss:$16 sps:$4 sm:$0xff]   ;;  %v2090_v51 = vld [vmem:[#allocation7 + $0x88] ss:$16 sps:$4 sm:$0xff]  }
  0x93   : > { %723 = vmatpush1.bf16.msra.mxu0 %v1954_v25  ;;  %v1994_v25 = vld [vmem:[#allocation2 + $0x190] ss:$8 sps:$4 sm:$0xff]  }
  0x94   : > { %724 = vmatprep.subr.bf16.mxu0 %v1955_v26  ;;  %1005 = vmatpush1.bf16.msra.mxu1 %v2041_v52  ;;  %v1999_v26 = vld [vmem:[#allocation2 + $0x1a4] ss:$8 sps:$4 sm:$0xff]  }
  0x95   : > { %1006 = vmatprep.subr.bf16.mxu1 %v2042_v53  ;;  %v2098_v52 = vld [vmem:[#allocation7 + $0xac] ss:$16 sps:$4 sm:$0xff]   ;;  %v2096_v53 = vld [vmem:[#allocation7 + $0xa8] ss:$16 sps:$4 sm:$0xff]  }
  0x97   : > { %725 = vmatpush1.bf16.msra.mxu0 %v1957_v27  ;;  %v1997_v27 = vld [vmem:[#allocation2 + $0x1a0] ss:$8 sps:$4 sm:$0xff]  }
  0x98   : > { %726 = vmatprep.subr.bf16.mxu0 %v1958_v28  ;;  %1007 = vmatpush1.bf16.msra.mxu1 %v2044_v54  ;;  %v2002_v28 = vld [vmem:[#allocation2 + $0x1b4] ss:$8 sps:$4 sm:$0xff]  }
  0x99   : > { %1008 = vmatprep.subr.bf16.mxu1 %v2045_v55  ;;  %v2104_v54 = vld [vmem:[#allocation7 + $0xcc] ss:$16 sps:$4 sm:$0xff]   ;;  %v2102_v55 = vld [vmem:[#allocation7 + $0xc8] ss:$16 sps:$4 sm:$0xff]  }
  0x9b   : > { %727 = vmatpush1.bf16.msra.mxu0 %v1960_v29  ;;  %v2000_v29 = vld [vmem:[#allocation2 + $0x1b0] ss:$8 sps:$4 sm:$0xff]  }
  0x9c   : > { %728 = vmatprep.subr.bf16.mxu0 %v1961_v30  ;;  %1009 = vmatpush1.bf16.msra.mxu1 %v2047_v56  ;;  %v2005_v30 = vld [vmem:[#allocation2 + $0x1c4] ss:$8 sps:$4 sm:$0xff]  }
  0x9d   : > { %1010 = vmatprep.subr.bf16.mxu1 %v2048_v57  ;;  %v2110_v56 = vld [vmem:[#allocation7 + $0xec] ss:$16 sps:$4 sm:$0xff]   ;;  %v2108_v57 = vld [vmem:[#allocation7 + $0xe8] ss:$16 sps:$4 sm:$0xff]  }
  0x9f   : > { %729 = vmatpush1.bf16.msra.mxu0 %v1963_v31  ;;  %v2003_v31 = vld [vmem:[#allocation2 + $0x1c0] ss:$8 sps:$4 sm:$0xff]  }
  0xa0   : > { %730 = vmatprep.subr.bf16.mxu0 %v1964_v32  ;;  %1011 = vmatpush1.bf16.msra.mxu1 %v2050_v58  ;;  %v2008_v32 = vld [vmem:[#allocation2 + $0x1d4] ss:$8 sps:$4 sm:$0xff]  }
  0xa1   : > { %1012 = vmatprep.subr.bf16.mxu1 %v2051_v59  ;;  %v2116_v58 = vld [vmem:[#allocation7 + $0x10c] ss:$16 sps:$4 sm:$0xff]   ;;  %v2114_v59 = vld [vmem:[#allocation7 + $0x108] ss:$16 sps:$4 sm:$0xff]  }
  0xa3   : > { %731 = vmatpush1.bf16.msra.mxu0 %v1966_v33  ;;  %v2006_v33 = vld [vmem:[#allocation2 + $0x1d0] ss:$8 sps:$4 sm:$0xff]  }
  0xa4   : > { %741 = vmatprep.subr.bf16.mxu0 %v1969_v34  ;;  %1013 = vmatpush1.bf16.msra.mxu1 %v2053_v60  ;;  %v2011_v34 = vld [vmem:[#allocation2 + $0x1e4] ss:$8 sps:$4 sm:$0xff]  }
  0xa5   : > { %1014 = vmatprep.subr.bf16.mxu1 %v2054_v62  ;;  %v2122_v60 = vld [vmem:[#allocation7 + $0x12c] ss:$16 sps:$4 sm:$0xff]   ;;  %v2120_v62 = vld [vmem:[#allocation7 + $0x128] ss:$16 sps:$4 sm:$0xff]  }
  0xa8   : > { %1015 = vmatpush1.bf16.msra.mxu1 %v2056_v63  ;;  %v2128_v63 = vld [vmem:[#allocation7 + $0x14c] ss:$16 sps:$4 sm:$0xff]  }
  0xa9   : > { %1016 = vmatprep.subr.bf16.mxu1 %v2057_v1  ;;  %v2134_v1 = vld [vmem:[#allocation7 + $0x16c] ss:$16 sps:$4 sm:$0xff]  }
  0xac   : > { %1017 = vmatpush1.bf16.msra.mxu1 %v2059_v2  ;;  %v2132_v2 = vld [vmem:[#allocation7 + $0x168] ss:$16 sps:$4 sm:$0xff]  }
  0xad   : > { %1018 = vmatprep.subr.bf16.mxu1 %v2060_v39  ;;  %v2141_v39 = vld [vmem:[#allocation7 + $0x1a0] ss:$16 sps:$4 sm:$0xff]  }
  0xb0   : > { %1019 = vmatpush1.bf16.msra.mxu1 %v2062_v40  ;;  %v2149_v40 = vld [vmem:[#allocation7 + $0x1c4] ss:$16 sps:$4 sm:$0xff]  }
  0xb1   : > { %1439 = vmatprep.subr.bf16.mxu1 %v2065_v41  ;;  %v2152_v41 = vld [vmem:[#allocation7 + $0x1cc] ss:$16 sps:$4 sm:$0xff]  }
  0xeb   : > { %v2518_v5 = vpop.permute.xlu0 %298 }
  0xec   : > { %vm300_vm0 = vcmp.eq.s32.totalorder %v2518_v5, %v2514_v0  ;;  %vm301_vm1 = vcmp.eq.s32.totalorder %v2518_v5, %v294_v3  ;;  %vm303_vm2 = vcmp.eq.s32.totalorder %v2518_v5, %v296_v4  ;;  %vm302_vm6 = vcmp.eq.s32.totalorder %v2518_v5, %v295_v37  ;;  %v2126_v0 = vld [vmem:[#allocation7 + $0x148] ss:$16 sps:$4 sm:$0xff]   ;;  %v2140_v3 = vld [vmem:[#allocation7 + $0x18c] ss:$16 sps:$4 sm:$0xff]   ;;  %v2135_v37 = vld [vmem:[#allocation7 + $0x180] ss:$16 sps:$4 sm:$0xff]  }
  0xed   : > { %vm1724_vm3 = vmpackc.low %vm301_vm1, %vm301_vm1  ;;  %v2138_v4 = vld [vmem:[#allocation7 + $0x188] ss:$16 sps:$4 sm:$0xff]   ;;  %v2146_v5 = vld [vmem:[#allocation7 + $0x1ac] ss:$16 sps:$4 sm:$0xff]  }
  0xee   : > { %1725 = vmatprep.mubr.msk.bf16.mxu0 %vm1724_vm3, %v2323_v8  ;;  %vm1726_vm4 = vmpackc.low %vm300_vm0, %vm300_vm0 }
  0xef   : > { %1727 = vmatmul.mubr.msk.bf16.vlgmr.msra.gmra.mrb[0].mxu0 %vm1726_vm4, %v2323_v8  ;;  %vm1728_vm5 = vmpackc.low %vm303_vm2, %vm303_vm2 }
  0xf0   : > { %742 = vmatpush1.bf16.msra.mxu0 %v1967_v6  ;;  %1729 = vmatprep.mubr.msk.bf16.mxu0 %vm1728_vm5, %v2323_v8  ;;  %vm1730_vm7 = vmpackc.low %vm302_vm6, %vm302_vm6  ;;  %v2144_v6 = vld [vmem:[#allocation7 + $0x1a8] ss:$16 sps:$4 sm:$0xff]  }
  0xf1   : > { %743 = vmatprep.subr.bf16.mxu0 %v1972_v7 }
  0xf4   : > { %744 = vmatpush1.bf16.msra.mxu0 %v1970_v9 }
  0xf5   : > { %745 = vmatprep.subr.bf16.mxu0 %v1975_v10 }
  0xf8   : > { %746 = vmatpush1.bf16.msra.mxu0 %v1973_v11  ;;  %v2063_v11 = vld [vmem:[#allocation7] ss:$16 sps:$4 sm:$0xff]  }
  0xf9   : > { %747 = vmatprep.subr.bf16.mxu0 %v1978_v12 }
  0xfc   : > { %748 = vmatpush1.bf16.msra.mxu0 %v1976_v13 }
  0xfd   : > { %749 = vmatprep.subr.bf16.mxu0 %v1981_v14  ;;  %v2071_v14 = vld [vmem:[#allocation7 + $0x24] ss:$16 sps:$4 sm:$0xff]  }
 0x100   : > { %750 = vmatpush1.bf16.msra.mxu0 %v1979_v15  ;;  %v2069_v15 = vld [vmem:[#allocation7 + $0x20] ss:$16 sps:$4 sm:$0xff]  }
 0x101   : > { %751 = vmatprep.subr.bf16.mxu0 %v1984_v16  ;;  %v2077_v16 = vld [vmem:[#allocation7 + $0x44] ss:$16 sps:$4 sm:$0xff]  }
 0x104   : > { %752 = vmatpush1.bf16.msra.mxu0 %v1982_v17  ;;  %v2075_v17 = vld [vmem:[#allocation7 + $0x40] ss:$16 sps:$4 sm:$0xff]  }
 0x105   : > { %753 = vmatprep.subr.bf16.mxu0 %v1987_v18  ;;  %v2083_v18 = vld [vmem:[#allocation7 + $0x64] ss:$16 sps:$4 sm:$0xff]  }
 0x108   : > { %754 = vmatpush1.bf16.msra.mxu0 %v1985_v19  ;;  %v2081_v19 = vld [vmem:[#allocation7 + $0x60] ss:$16 sps:$4 sm:$0xff]  }
 0x109   : > { %755 = vmatprep.subr.bf16.mxu0 %v1990_v20  ;;  %v2089_v20 = vld [vmem:[#allocation7 + $0x84] ss:$16 sps:$4 sm:$0xff]  }
 0x10c   : > { %756 = vmatpush1.bf16.msra.mxu0 %v1988_v21  ;;  %v2087_v21 = vld [vmem:[#allocation7 + $0x80] ss:$16 sps:$4 sm:$0xff]  }
 0x10d   : > { %757 = vmatprep.subr.bf16.mxu0 %v1993_v22  ;;  %v2095_v22 = vld [vmem:[#allocation7 + $0xa4] ss:$16 sps:$4 sm:$0xff]  }
 0x110   : > { %758 = vmatpush1.bf16.msra.mxu0 %v1991_v23  ;;  %v2093_v23 = vld [vmem:[#allocation7 + $0xa0] ss:$16 sps:$4 sm:$0xff]  }
 0x111   : > { %759 = vmatprep.subr.bf16.mxu0 %v1996_v24  ;;  %v2101_v24 = vld [vmem:[#allocation7 + $0xc4] ss:$16 sps:$4 sm:$0xff]  }
 0x114   : > { %760 = vmatpush1.bf16.msra.mxu0 %v1994_v25  ;;  %v2099_v25 = vld [vmem:[#allocation7 + $0xc0] ss:$16 sps:$4 sm:$0xff]  }
 0x115   : > { %761 = vmatprep.subr.bf16.mxu0 %v1999_v26  ;;  %v2107_v26 = vld [vmem:[#allocation7 + $0xe4] ss:$16 sps:$4 sm:$0xff]  }
 0x118   : > { %762 = vmatpush1.bf16.msra.mxu0 %v1997_v27  ;;  %v2105_v27 = vld [vmem:[#allocation7 + $0xe0] ss:$16 sps:$4 sm:$0xff]  }
 0x119   : > { %763 = vmatprep.subr.bf16.mxu0 %v2002_v28  ;;  %v2113_v28 = vld [vmem:[#allocation7 + $0x104] ss:$16 sps:$4 sm:$0xff]  }
 0x11c   : > { %764 = vmatpush1.bf16.msra.mxu0 %v2000_v29  ;;  %v2111_v29 = vld [vmem:[#allocation7 + $0x100] ss:$16 sps:$4 sm:$0xff]  }
 0x11d   : > { %765 = vmatprep.subr.bf16.mxu0 %v2005_v30  ;;  %v2119_v30 = vld [vmem:[#allocation7 + $0x124] ss:$16 sps:$4 sm:$0xff]  }
 0x120   : > { %766 = vmatpush1.bf16.msra.mxu0 %v2003_v31  ;;  %v2117_v31 = vld [vmem:[#allocation7 + $0x120] ss:$16 sps:$4 sm:$0xff]  }
 0x121   : > { %767 = vmatprep.subr.bf16.mxu0 %v2008_v32  ;;  %v2125_v32 = vld [vmem:[#allocation7 + $0x144] ss:$16 sps:$4 sm:$0xff]  }
 0x124   : > { %768 = vmatpush1.bf16.msra.mxu0 %v2006_v33  ;;  %v2123_v33 = vld [vmem:[#allocation7 + $0x140] ss:$16 sps:$4 sm:$0xff]  }
 0x125   : > { %769 = vmatprep.subr.bf16.mxu0 %v2011_v34  ;;  %v2131_v34 = vld [vmem:[#allocation7 + $0x164] ss:$16 sps:$4 sm:$0xff]  }
 0x128   : > { %770 = vmatpush1.bf16.msra.mxu0 %v2009_v35  ;;  %v2129_v35 = vld [vmem:[#allocation7 + $0x160] ss:$16 sps:$4 sm:$0xff]  }
 0x129   : > { %771 = vmatprep.subr.bf16.mxu0 %v2014_v36  ;;  %v2137_v36 = vld [vmem:[#allocation7 + $0x184] ss:$16 sps:$4 sm:$0xff]  }
 0x12c   : > { %772 = vmatpush1.bf16.msra.mxu0 %v2012_v38  ;;  %v2143_v38 = vld [vmem:[#allocation7 + $0x1a4] ss:$16 sps:$4 sm:$0xff]  }
 0x12d   : > { %1480 = vmatprep.subr.bf16.mxu0 %v2068_v43  ;;  %v2150_v43 = vld [vmem:[#allocation7 + $0x1c8] ss:$16 sps:$4 sm:$0xff]  }
 0x12f   : > { %1731 = vmatmul.mubr.msk.bf16.vlgmr.msra.gmra.mrb[0].mxu0 %vm1730_vm7, %v2323_v8 }
 0x130   : > { %1481 = vmatpush1.bf16.msra.mxu0 %v2066_v42  ;;  %v2147_v42 = vld [vmem:[#allocation7 + $0x1c0] ss:$16 sps:$4 sm:$0xff]  }
 0x131   : > { %1482 = vmatprep.subr.bf16.mxu0 %v2074_v44  ;;  %v2155_v44 = vld [vmem:[#allocation7 + $0x1e4] ss:$16 sps:$4 sm:$0xff]  }
 0x134   : > { %1483 = vmatpush1.bf16.msra.mxu0 %v2072_v45  ;;  %v2158_v45 = vld [vmem:[#allocation7 + $0x1ec] ss:$16 sps:$4 sm:$0xff]  }
 0x135   : > { %1484 = vmatprep.subr.bf16.mxu0 %v2080_v46  ;;  %v2153_v46 = vld [vmem:[#allocation7 + $0x1e0] ss:$16 sps:$4 sm:$0xff]  }
 0x138   : > { %1485 = vmatpush1.bf16.msra.mxu0 %v2078_v47  ;;  %v2156_v47 = vld [vmem:[#allocation7 + $0x1e8] ss:$16 sps:$4 sm:$0xff]  }
 0x139   : > { %1486 = vmatprep.subr.bf16.mxu0 %v2086_v48  ;;  %v819_v48 = vshrl.u32 %v292_v61, 7 }
 0x13c   : > { %1487 = vmatpush1.bf16.msra.mxu0 %v2084_v49  ;;  %v820_v49 = vsub.s32 0, %v819_v48 }
 0x13d   : > { %1488 = vmatprep.subr.bf16.mxu0 %v2092_v50  ;;  %v816_v50 = vld [vmem:[%s2591_s3] sm:$0x3] }
 0x140   : > { %1489 = vmatpush1.bf16.msra.mxu0 %v2090_v51  ;;  %v824_v51 = vsub.s32 1, %v819_v48 }
 0x141   : > { %1490 = vmatprep.subr.bf16.mxu0 %v2098_v52  ;;  %v821_v52 = vrot.slane %v816_v50, %v820_v49 }
 0x144   : > { %1491 = vmatpush1.bf16.msra.mxu0 %v2096_v53  ;;  %v825_v53 = vrot.slane %v816_v50, %v824_v51 }
 0x145   : > { %1492 = vmatprep.subr.bf16.mxu0 %v2104_v54 }
 0x148   : > { %1493 = vmatpush1.bf16.msra.mxu0 %v2102_v55 }
 0x149   : > { %1494 = vmatprep.subr.bf16.mxu0 %v2110_v56 }
 0x14c   : > { %1495 = vmatpush1.bf16.msra.mxu0 %v2108_v57 }
 0x14d   : > { %1496 = vmatprep.subr.bf16.mxu0 %v2116_v58 }
 0x150   : > { %1497 = vmatpush1.bf16.msra.mxu0 %v2114_v59 }
 0x151   : > { %1498 = vmatprep.subr.bf16.mxu0 %v2122_v60 }
 0x154   : > { %1499 = vmatpush1.bf16.msra.mxu0 %v2120_v62 }
 0x155   : > { %1500 = vmatprep.subr.bf16.mxu0 %v2128_v63 }
 0x158   : > { %1501 = vmatpush1.bf16.msra.mxu0 %v2126_v0  ;;  %v1109_v0 = vsub.s32 2, %v819_v48 }
 0x159   : > { %1502 = vmatprep.subr.bf16.mxu0 %v2134_v1  ;;  %v1097_v1 = vld [vmem:[%s2593_s5] sm:$0xf] }
 0x15c   : > { %1503 = vmatpush1.bf16.msra.mxu0 %v2132_v2  ;;  %v1113_v2 = vsub.s32 3, %v819_v48 }
 0x15d   : > { %1504 = vmatprep.subr.bf16.mxu0 %v2140_v3  ;;  %v1102_v3 = vrot.slane %v1097_v1, %v820_v49 }
 0x160   : > { %1505 = vmatpush1.bf16.msra.mxu0 %v2138_v4  ;;  %v1110_v4 = vrot.slane %v1097_v1, %v1109_v0 }
 0x161   : > { %1506 = vmatprep.subr.bf16.mxu0 %v2146_v5  ;;  %v1106_v5 = vrot.slane %v1097_v1, %v824_v51 }
 0x164   : > { %1507 = vmatpush1.bf16.msra.mxu0 %v2144_v6  ;;  %v1114_v6 = vrot.slane %v1097_v1, %v1113_v2 }
 0x165   : > { %1508 = vmatprep.subr.bf16.mxu0 %v2152_v41 }
 0x168   : > { %1509 = vmatpush1.bf16.msra.mxu0 %v2150_v43 }
 0x169   : > { %1510 = vmatprep.subr.bf16.mxu0 %v2158_v45 }
 0x16c   : > { %1511 = vmatpush1.bf16.msra.mxu0 %v2156_v47 }
 0x202   : > { %v775_v7 = vpop.f32.mrb[0].mxu0 }
 0x203   : > { %v777_v8 = vpop.f32.mrb[1].mxu0  ;;  %v782_v12 = vpack.c.bf16 %v775_v7, %v775_v7 }
 0x204   : > { %v779_v9 = vpop.f32.mrb[2].mxu0  ;;  %v783_v10 = vpack.c.bf16 %v777_v8, %v777_v8 }
 0x205   : > { %v780_v13 = vpop.f32.mrb[3].mxu0 }
 0x206   : > { %1020 = vmatprep.mubr.bf16.mxu1 %v783_v10 }
 0x207   : > { %1021 = vmatmul.mubr.bf16.vlgmr.msra.gmra.mrb[0].mxu1 %v782_v12 }
 0x208   : > { %1440 = vmatpush1.bf16.msra.mxu1 %v2063_v11 }
 0x209   : > { %1441 = vmatprep.subr.bf16.mxu1 %v2071_v14 }
 0x20c   : > { %1442 = vmatpush1.bf16.msra.mxu1 %v2069_v15 }
 0x20d   : > { %1443 = vmatprep.subr.bf16.mxu1 %v2077_v16 }
 0x210   : > { %1444 = vmatpush1.bf16.msra.mxu1 %v2075_v17 }
 0x211   : > { %1445 = vmatprep.subr.bf16.mxu1 %v2083_v18 }
 0x214   : > { %1446 = vmatpush1.bf16.msra.mxu1 %v2081_v19 }
 0x215   : > { %1447 = vmatprep.subr.bf16.mxu1 %v2089_v20 }
 0x218   : > { %1448 = vmatpush1.bf16.msra.mxu1 %v2087_v21 }
 0x219   : > { %1449 = vmatprep.subr.bf16.mxu1 %v2095_v22 }
 0x21c   : > { %1450 = vmatpush1.bf16.msra.mxu1 %v2093_v23 }
 0x21d   : > { %1451 = vmatprep.subr.bf16.mxu1 %v2101_v24 }
 0x220   : > { %1452 = vmatpush1.bf16.msra.mxu1 %v2099_v25 }
 0x221   : > { %1453 = vmatprep.subr.bf16.mxu1 %v2107_v26 }
 0x224   : > { %1454 = vmatpush1.bf16.msra.mxu1 %v2105_v27 }
 0x225   : > { %1455 = vmatprep.subr.bf16.mxu1 %v2113_v28 }
 0x228   : > { %1456 = vmatpush1.bf16.msra.mxu1 %v2111_v29 }
 0x229   : > { %1457 = vmatprep.subr.bf16.mxu1 %v2119_v30 }
 0x22c   : > { %1458 = vmatpush1.bf16.msra.mxu1 %v2117_v31 }
 0x22d   : > { %1459 = vmatprep.subr.bf16.mxu1 %v2125_v32 }
 0x230   : > { %1460 = vmatpush1.bf16.msra.mxu1 %v2123_v33 }
 0x231   : > { %1461 = vmatprep.subr.bf16.mxu1 %v2131_v34 }
 0x234   : > { %1462 = vmatpush1.bf16.msra.mxu1 %v2129_v35 }
 0x235   : > { %1463 = vmatprep.subr.bf16.mxu1 %v2137_v36 }
 0x238   : > { %1464 = vmatpush1.bf16.msra.mxu1 %v2135_v37 }
 0x239   : > { %1465 = vmatprep.subr.bf16.mxu1 %v2143_v38 }
 0x23c   : > { %1466 = vmatpush1.bf16.msra.mxu1 %v2141_v39 }
 0x23d   : > { %1467 = vmatprep.subr.bf16.mxu1 %v2149_v40 }
 0x240   : > { %1468 = vmatpush1.bf16.msra.mxu1 %v2147_v42 }
 0x241   : > { %1469 = vmatprep.subr.bf16.mxu1 %v2155_v44 }
 0x244   : > { %1470 = vmatpush1.bf16.msra.mxu1 %v2153_v46 }
 0x2da   : > { %v1022_v54 = vpop.f32.mrb[0].mxu1 }
 0x2db   : > { %v1023_v55 = vadd.f32 %v1022_v54, %v821_v52  ;;  %v1024_v56 = vpop.f32.mrb[1].mxu1 }
 0x2dc   : > { %v1025_v57 = vadd.f32 %v1024_v56, %v825_v53  ;;  %v1026_v58 = vpop.f32.mrb[2].mxu1 }
 0x2dd   : > { %v1029_v59 = vmax.f32 %v1023_v55, 0.0  ;;  %v1027_v60 = vpop.f32.mrb[3].mxu1 }
 0x2de   : > { %v1030_v62 = vmax.f32 %v1025_v57, 0.0 }
 0x2df   : > { %v1031_v61 = vpack.c.bf16 %v1029_v59, %v1029_v59 }
 0x2e0   : > { %v1032_v63 = vpack.c.bf16 %v1030_v62, %v1030_v62 }
 0x2e2   : > { %1471 = vmatprep.mubr.bf16.mxu1 %v1032_v63  ;;  %1512 = vmatprep.mubr.bf16.mxu0 %v1032_v63 }
 0x2e3   : > { %1472 = vmatmul.mubr.bf16.vlgmr.msra.gmra.mrb[4].mxu1 %v1031_v61  ;;  %1513 = vmatmul.mubr.bf16.vlgmr.msra.gmra.mrb[4].mxu0 %v1031_v61 }
 0x3b6   : > { %v1473_v7 = vpop.f32.mrb[4].mxu1  ;;  %v1514_v8 = vpop.f32.mrb[4].mxu0 }
 0x3b7   : > { %v1474_v9 = vadd.f32 %v1473_v7, %v1102_v3  ;;  %v1515_v10 = vadd.f32 %v1514_v8, %v1110_v4  ;;  %v1475_v11 = vpop.f32.mrb[5].mxu1  ;;  %v1516_v12 = vpop.f32.mrb[5].mxu0 }
 0x3b8   : > { %v1476_v13 = vadd.f32 %v1475_v11, %v1106_v5  ;;  %v1517_v14 = vadd.f32 %v1516_v12, %v1114_v6  ;;  %v1477_v15 = vpop.f32.mrb[6].mxu1  ;;  %v1518_v16 = vpop.f32.mrb[6].mxu0 }
 0x3b9   : > { %v1478_v17 = vpop.f32.mrb[7].mxu1  ;;  %v1519_v18 = vpop.f32.mrb[7].mxu0 }
 0x3ba   : > { %v1835_v19 = vpack.c.bf16 %v1476_v13, %v1474_v9  ;;  %v1836_v20 = vpack.c.bf16 %v1517_v14, %v1515_v10 }
 0x3bc   : > { %1537 = vst [vmem:[%s286_s11] sm:$0xff] %v1835_v19  ;;  %1538 = vst [vmem:[%s286_s11 + $0x8] sm:$0xff] %v1836_v20 }
 0x3bd   : > { %2256 = shalt.err (!%p2253_p9)
}
 0x3be   : > { %s2257_s30 = scalar_lea.hbm %s2544_s23, 256  ;;  %s2261_s20 = scalar_lea.hbm %s2594_s6, 512 }
 0x3bf   : > { %p2258_p2 = scmp.ne.s32.totalorder %s2544_s23, %s2257_s30  ;;  %p2262_p5 = scmp.lt.u32.totalorder %s2544_s23, %s2594_s6 }
 0x3c0   : > { %p2263_p10 = scmp.lt.u32.totalorder %s2261_s20, %s2257_s30  ;;  %p2265_p12 = scmp.lt.u32.totalorder %s2257_s30, %s2544_s23 }
 0x3c1   : > { %p2259_p3 = pnand %p2258_p2, %p2611_p7 }
 0x3c2   : > { %p2264_p4 = por %p2263_p10, %p2262_p5 }
 0x3c3   : > { %p2260_p0 = pneg %p2259_p3 }
 0x3c4   : > { %p2266_p8 = por %p2265_p12, %p2264_p4 }
 0x3c6   : > { %p2267_p11 = pnand %p2266_p8, %p2260_p0 }
 0x3c8   : > { %2270 = shalt.err (!%p2267_p11)
}
 0x3c9   : > { %1854 = dma.vmem_to_hbm [thread:$0]  (%p2611_p7), %s2546_s14, 256, %s2544_s23, %s1540_s25  }
 0x3ca PF: > { %p1876_p13 = scmp.ge.s32.totalorder %s2313_s24, 2  ;;  %s1566_s10 = sand.u32 1, %s2301_s21  }
 0x3cb   : > { %p2612_p1 = scmp.ne.s32.totalorder %s2602_s8, 0  ;;  %s1567_s13 = scalar_lea.sflag [#allocation4], %s1566_s10 }
 0x3cd   : > { %p1867_p6 = pnand %p1876_p13, %p2612_p1 }
 0x3cf   : > { %2296 = dma.done.wait (!%p1867_p6), %s1567_s13, 256  }
 0x3d0   : > { %2298 = vsyncadd (!%p1867_p6), %s1567_s13, 4294967040  ;;  %s2613_s11 = sld [smem:[#allocation12_spill]]  ;;  %s2614_s23 = sld [smem:[#allocation13_spill]] }
 0x3d1   : > { %p18_p9 = scmp.ge.s32.totalorder %s2385_s27, 4   ;;  %s2615_s21 = smov %s2305_s22 }
 0x3d2   : > { %s2617_s24 = smov %s2385_s27 }
 0x3d3   :  { %20 = sbr.rel (!%p18_p9) target bundleno = 5 (0x5), region = 92 }
 0x3d6   : > { %s2616_s22 = smov %s2613_s11 }
 0x3da   :  { %1572 = vsyncpa [#allocation3], 1 }
 0x3db   :  { %1574 = vsyncpa [#allocation3 + $0x1], 1 }
 0x3dc   :  { %1575 = vsyncpa [#allocation6], 1 }
 0x3dd   :  { %1576 = vsyncpa [#allocation4], 1 }
 0x3de   :  { %1578 = vsyncpa [#allocation4 + $0x1], 1 }

</bundles_post_ra>
